<compile_context>
chip_gen: v5e
topology: v5e:2x2
jax: 0.10.0
libtpu: 0.0.40
codegen_flags: <defaults>
</compile_context>

<pallas_src>
import functools

import numpy as np
import jax
import jax.numpy as jnp
from jax import lax
from jax.experimental import pallas as pl
from jax.experimental.pallas import tpu as pltpu


def _pad8(c):
    return ((c + 7) // 8) * 8


# ----------------------------------------------------------------------------
# Pallas kernel: processes Nb images per grid step.
# Activations are (C, L) with L = Nb*H*W on the lane axis.
# ----------------------------------------------------------------------------
def _gen_pipeline_kernel(x_ref, mask_ref,
                         w0_ref, w1_ref, w2_ref, w3_ref,
                         b_ref, o_ref,
                         *, H, W, ks, L, bias_offs, mxu_bf16):
    T = ks * ks
    p = ks // 2
    mask = mask_ref[...]                              # (T, L), {0,1} f32
    w_refs = (w0_ref, w1_ref, w2_ref, w3_ref)
    n_layers = len(w_refs)

    def mm(lhs, rhs):
        # Optional bf16 MXU operands (compute-bound large-H*W regime on
        # v6e/v7x); accumulation stays f32 either way.
        if mxu_bf16:
            lhs = lhs.astype(jnp.bfloat16)
            rhs = rhs.astype(jnp.bfloat16)
        return jnp.dot(lhs, rhs, preferred_element_type=jnp.float32)

    h = x_ref[...]                                    # (c0, L) f32
    for li in range(n_layers):
        w = w_refs[li][...]                           # (cout, K) full-extent load
        cout = w.shape[0]
        roff = bias_offs[li]
        b = b_ref[roff:roff + cout, :]                # (cout, 1), 8-aligned rows

        if li < n_layers - 1:
            # Depthwise kxk taps -> channel-im2col patch (T*cin, L).  The
            # depthwise filter is already folded into `w`, so one MXU matmul
            # (K = T*cin) replaces the per-tap VPU multiply-accumulate chain.
            taps = []
            t = 0
            for dy in range(ks):
                for dx in range(ks):
                    s = (dy - p) * W + (dx - p)       # flat source offset
                    if s == 0:
                        taps.append(h)                # center tap: mask == 1
                    else:
                        shifted = pltpu.roll(h, (-s) % L, axis=1)   # XLU roll
                        taps.append(shifted * mask[t:t + 1, :])     # border mask
                    t += 1
            rhs = jnp.concatenate(taps, axis=0)       # (T*cin, L), 8-aligned rows
        else:
            rhs = h                                   # final 1x1 conv

        h = jnp.maximum(mm(w, rhs) + b, 0.0)          # conv + bias + ReLU

    o_ref[...] = h                                    # (nc, L) lane-dense store


# ----------------------------------------------------------------------------
# Chip-aware blocking.
# ----------------------------------------------------------------------------
def _chip_config():
    kind = ""
    try:
        kind = jax.devices()[0].device_kind.lower()
    except Exception:
        pass
    if "7" in kind:
        # v7x: 2 TensorCores/chip, only 64 MiB VMEM per TC -> leave headroom.
        return dict(num_cores=2, max_lane_elems=16384, vmem_cap=48 * (1 << 20))
    if "6" in kind:
        # v6e: 1 TC, 128 MiB physical VMEM.
        return dict(num_cores=1, max_lane_elems=32768, vmem_cap=100 * (1 << 20))
    if "5" in kind:
        # v5e: 1 TC, 128 MiB physical VMEM (no bf16 VPU, but MXU path is f32 here).
        return dict(num_cores=1, max_lane_elems=24576, vmem_cap=96 * (1 << 20))
    return dict(num_cores=1, max_lane_elems=8192, vmem_cap=48 * (1 << 20))


def _pick_batch_block(n, hw, max_lane_elems, num_cores):
    """Largest legal batch block under the lane cap; only force >= num_cores
    grid steps when the chip actually has multiple TensorCores."""
    legal = [d for d in range(1, n + 1)
             if n % d == 0 and ((d * hw) % 128 == 0 or d == n)]
    fitting = [d for d in legal if d * hw <= max_lane_elems]
    if fitting:
        multi = [d for d in fitting if (n // d) >= num_cores]
        pool = multi if multi else fitting
        return max(pool)
    # Nothing fits the cap: take the smallest legal block (vmem_limit is sized
    # for it below).  TODO(synk): spatial row tiling for very large H*W.
    return min(legal)


def _make_tap_mask(nb, H, W, ks):
    """(ks*ks, nb*H*W) f32 border-validity mask, computed host-side."""
    p = ks // 2
    hw = H * W
    L = nb * hw
    local = np.arange(L, dtype=np.int64) % hw
    yy, xx = local // W, local % W
    rows = []
    for dy in range(ks):
        for dx in range(ks):
            oy, ox = dy - p, dx - p
            rows.append(((yy + oy >= 0) & (yy + oy < H)
                         & (xx + ox >= 0) & (xx + ox < W)).astype(np.float32))
    return jnp.asarray(np.stack(rows, axis=0))


# ----------------------------------------------------------------------------
# Wrapper: layout conversion, BN + depthwise folding, blocking, pallas_call.
# ----------------------------------------------------------------------------
def generator_pipeline(x_nchw, pt_params, *, ks, eps=1e-5,
                       batch_block=None, mxu_bf16=False):
    N, nc, H, W = x_nchw.shape
    HW = H * W
    T = ks * ks
    assert ks % 2 == 1, "padding=ks//2 'same' conv only matches PyTorch for odd ks"

    cfg = _chip_config()
    nb = batch_block if batch_block is not None else _pick_batch_block(
        N, HW, cfg["max_lane_elems"], cfg["num_cores"])
    assert N % nb == 0 and ((nb * HW) % 128 == 0 or nb == N), (nb, HW)
    L = nb * HW
    grid = (N // nb,)

    blocks = pt_params["blocks"]
    cin_list = [b["pw_w"].shape[1] for b in blocks]
    cout_list = [b["pw_w"].shape[0] for b in blocks]
    for i in range(1, len(blocks)):
        assert cin_list[i] == cout_list[i - 1]
    # Channel chain padded to multiples of 8 (keeps tap concatenation aligned).
    cp = [_pad8(cin_list[0])] + [_pad8(c) for c in cout_list]

    # --- fold depthwise + BN into effective pointwise weights ---------------
    w_list, b_list = [], []
    for i, blk in enumerate(blocks):
        cin, cout = cin_list[i], cout_list[i]
        cpi, cpo = cp[i], cp[i + 1]
        scale = (blk["gamma"] / jnp.sqrt(blk["var"] + eps)).astype(jnp.float32)
        pw_f = blk["pw_w"][:, :, 0, 0].astype(jnp.float32) * scale[:, None]
        pb_f = (blk["pw_b"] - blk["mean"]) * scale + blk["beta"]
        dw = blk["dw_w"].reshape(cin, T).astype(jnp.float32)
        db = blk["dw_b"].astype(jnp.float32)
        pw_p = jnp.zeros((cpo, cpi), jnp.float32).at[:cout, :cin].set(pw_f)
        dw_p = jnp.zeros((cpi, T), jnp.float32).at[:cin, :].set(dw)
        db_p = jnp.zeros((cpi,), jnp.float32).at[:cin].set(db)
        pb_p = jnp.zeros((cpo,), jnp.float32).at[:cout].set(pb_f.astype(jnp.float32))
        # W_eff[o, t*cpi + c] = pw[o,c] * dw[c,t]  (tap-major, channel-minor)
        w_eff = (pw_p[:, None, :] * dw_p.T[None, :, :]).reshape(cpo, T * cpi)
        b_eff = (pw_p @ db_p + pb_p).reshape(cpo, 1)
        w_list.append(w_eff)
        b_list.append(b_eff)
    fw = pt_params["fw"][:, :, 0, 0].astype(jnp.float32)          # (nc, 4*nchan)
    fw_p = jnp.zeros((nc, cp[-1]), jnp.float32).at[:, :cout_list[-1]].set(fw)
    fb = pt_params["fb"].reshape(nc, 1).astype(jnp.float32)
    w_list.append(fw_p)
    b_list.append(fb)

    # Pack all biases into one (rows, 1) array; offsets are multiples of 8.
    bias_offs, off = [], 0
    for b in b_list:
        bias_offs.append(off)
        off += b.shape[0]
    bpack = jnp.concatenate(b_list, axis=0)                       # (rows, 1)
    bias_offs = tuple(int(o) for o in bias_offs)

    # --- lane-dense input layout (C on sublanes, pixels on lanes) -----------
    x_cl = jnp.transpose(x_nchw, (1, 0, 2, 3)).reshape(nc, N * HW).astype(jnp.float32)
    if cp[0] > nc:
        x_cl = jnp.pad(x_cl, ((0, cp[0] - nc), (0, 0)))

    mask = _make_tap_mask(nb, H, W, ks)                           # (T, L)

    # --- VMEM budget matched to the chosen L ---------------------------------
    bytes_per_lane = 4 * (2 * cp[0] + 2 * nc + T                  # I/O dbuf + mask
                          + cp[-1]                                # widest activation
                          + 2 * T * max(cp[:-1]))                 # patch + tap temps
    est = bytes_per_lane * L + 4 * (sum(int(w.size) for w in w_list)
                                    + int(bpack.size)) + (2 << 20)
    vmem_limit = int(min(cfg["vmem_cap"], max(32 << 20, 2 * est)))

    io_in_spec = pl.BlockSpec((cp[0], L), lambda n: (0, n))
    io_out_spec = pl.BlockSpec((nc, L), lambda n: (0, n))
    const_specs = [pl.BlockSpec(mask.shape, lambda n: (0, 0))]
    const_specs += [pl.BlockSpec(w.shape, lambda n: (0, 0)) for w in w_list]
    const_specs += [pl.BlockSpec(bpack.shape, lambda n: (0, 0))]

    kernel = functools.partial(_gen_pipeline_kernel, H=H, W=W, ks=ks, L=L,
                               bias_offs=bias_offs, mxu_bf16=mxu_bf16)
    out = pl.pallas_call(
        kernel,
        out_shape=jax.ShapeDtypeStruct((nc, N * HW), jnp.float32),
        grid_spec=pltpu.PrefetchScalarGridSpec(
            num_scalar_prefetch=0,
            grid=grid,
            in_specs=[io_in_spec] + const_specs,
            out_specs=io_out_spec,
        ),
        compiler_params=pltpu.CompilerParams(
            dimension_semantics=("parallel",),
            vmem_limit_bytes=vmem_limit),
    )(x_cl, mask, *w_list, bpack)

    # (nc, N*H*W) -> NCHW (layout plumbing handled by XLA outside the kernel).
    return jnp.transpose(out.reshape(nc, N, H, W), (1, 0, 2, 3))


# ----------------------------------------------------------------------------
# Pure-JAX (lax.conv) reference for correctness checking.
# ----------------------------------------------------------------------------
def reference(x_nchw, pt_params, *, ks, eps=1e-5):
    p = ks // 2

    def dw_conv(x, w, b):
        y = lax.conv_general_dilated(
            x, w, (1, 1), [(p, p), (p, p)],
            feature_group_count=x.shape[1],
            dimension_numbers=("NCHW", "OIHW", "NCHW"),
            precision=lax.Precision.HIGHEST)
        return y + b[None, :, None, None]

    def pw_conv(x, w, b):
        y = lax.conv_general_dilated(
            x, w, (1, 1), "VALID",
            dimension_numbers=("NCHW", "OIHW", "NCHW"),
            precision=lax.Precision.HIGHEST)
        return y + b[None, :, None, None]

    h = x_nchw.astype(jnp.float32)
    for blk in pt_params["blocks"]:
        h = dw_conv(h, blk["dw_w"], blk["dw_b"])
        h = pw_conv(h, blk["pw_w"], blk["pw_b"])
        s = blk["gamma"] / jnp.sqrt(blk["var"] + eps)
        h = (h - blk["mean"][None, :, None, None]) * s[None, :, None, None] \
            + blk["beta"][None, :, None, None]
        h = jnp.maximum(h, 0.0)
    h = pw_conv(h, pt_params["fw"], pt_params["fb"])
    return jnp.maximum(h, 0.0)


# ----------------------------------------------------------------------------
# Deterministic parameter construction + driver.
# ----------------------------------------------------------------------------
def make_params(key, *, nc, nchan, ks):
    cins = [nc, nchan, 2 * nchan]
    couts = [nchan, 2 * nchan, 4 * nchan]
    keys = iter(jax.random.split(key, 32))
    blocks = []
    for cin, cout in zip(cins, couts):
        blocks.append(dict(
            dw_w=0.2 * jax.random.normal(next(keys), (cin, 1, ks, ks), jnp.float32),
            dw_b=0.1 * jax.random.normal(next(keys), (cin,), jnp.float32),
            pw_w=0.2 * jax.random.normal(next(keys), (cout, cin, 1, 1), jnp.float32),
            pw_b=0.1 * jax.random.normal(next(keys), (cout,), jnp.float32),
            gamma=1.0 + 0.1 * jax.random.normal(next(keys), (cout,), jnp.float32),
            beta=0.1 * jax.random.normal(next(keys), (cout,), jnp.float32),
            mean=0.05 * jax.random.normal(next(keys), (cout,), jnp.float32),
            var=jnp.abs(1.0 + 0.1 * jax.random.normal(next(keys), (cout,), jnp.float32)),
        ))
    fw = 0.2 * jax.random.normal(next(keys), (nc, couts[-1], 1, 1), jnp.float32)
    fb = 0.1 * jax.random.normal(next(keys), (nc,), jnp.float32)
    return dict(blocks=blocks, fw=fw, fb=fb)


if __name__ == "__main__":
    hps = dict(nc=4, nchan=8, ks=3)
    N, H, W = 2, 16, 16

    key = jax.random.PRNGKey(0)
    kx, kp = jax.random.split(key)
    x = jax.random.normal(kx, (N, hps["nc"], H, W), jnp.float32)  # NCHW input
    params = make_params(kp, nc=hps["nc"], nchan=hps["nchan"], ks=hps["ks"])

    ref = jax.block_until_ready(reference(x, params, ks=hps["ks"]))

    # Default path (chip-aware batch-block / grid selection).
    out = jax.block_until_ready(generator_pipeline(x, params, ks=hps["ks"]))
    assert out.shape == (N, hps["nc"], H, W), out.shape
    err = float(jnp.max(jnp.abs(out - ref)))
    assert err < 1e-2, f"default path: max abs err {err}"

    # Explicitly exercise nb > 1 (multi-image lane block: cross-image roll +
    # border masking) and nb == 1 (multi-step grid), independent of chip.
    for nb in (2, 1):
        out_nb = jax.block_until_ready(
            generator_pipeline(x, params, ks=hps["ks"], batch_block=nb))
        err_nb = float(jnp.max(jnp.abs(out_nb - ref)))
        assert err_nb < 1e-2, f"nb={nb}: max abs err {err_nb}"

    print("KERNEL_OK")
</pallas_src>

<mosaic_0001>
module attributes {stable_mosaic.version = 11 : i64} {
  func.func @_gen_pipeline_kernel(%arg0: i32, %arg1: memref<8x512xf32, #tpu.memory_space<vmem>>, %arg2: memref<9x512xf32, #tpu.memory_space<vmem>>, %arg3: memref<8x72xf32, #tpu.memory_space<vmem>>, %arg4: memref<16x72xf32, #tpu.memory_space<vmem>>, %arg5: memref<32x144xf32, #tpu.memory_space<vmem>>, %arg6: memref<4x32xf32, #tpu.memory_space<vmem>>, %arg7: memref<60x1xf32, #tpu.memory_space<vmem>>, %arg8: memref<4x512xf32, #tpu.memory_space<vmem>>) attributes {dimension_semantics = [#tpu.dimension_semantics<parallel>], iteration_bounds = array<i64: 1>, scalar_prefetch = 0 : i64, scratch_operands = 0 : i64, tpu.core_type = #tpu.core_type<tc>, window_params = [{transform_indices = @transform_0, window_bounds = array<i64: 8, 512>}, {pipeline_mode = #tpu.pipeline_mode<synchronous>, transform_indices = @transform_1, window_bounds = array<i64: 9, 512>}, {pipeline_mode = #tpu.pipeline_mode<synchronous>, transform_indices = @transform_2, window_bounds = array<i64: 8, 72>}, {pipeline_mode = #tpu.pipeline_mode<synchronous>, transform_indices = @transform_3, window_bounds = array<i64: 16, 72>}, {pipeline_mode = #tpu.pipeline_mode<synchronous>, transform_indices = @transform_4, window_bounds = array<i64: 32, 144>}, {pipeline_mode = #tpu.pipeline_mode<synchronous>, transform_indices = @transform_5, window_bounds = array<i64: 4, 32>}, {pipeline_mode = #tpu.pipeline_mode<synchronous>, transform_indices = @transform_6, window_bounds = array<i64: 60, 1>}, {transform_indices = @transform_7, window_bounds = array<i64: 4, 512>}]} {
    %c0 = arith.constant 0 : index
    %c0_0 = arith.constant 0 : index
    %0 = vector.load %arg2[%c0, %c0_0] : memref<9x512xf32, #tpu.memory_space<vmem>>, vector<9x512xf32>
    %c0_1 = arith.constant 0 : index
    %c0_2 = arith.constant 0 : index
    %1 = vector.load %arg1[%c0_1, %c0_2] : memref<8x512xf32, #tpu.memory_space<vmem>>, vector<8x512xf32>
    %c0_3 = arith.constant 0 : index
    %c0_4 = arith.constant 0 : index
    %2 = vector.load %arg3[%c0_3, %c0_4] : memref<8x72xf32, #tpu.memory_space<vmem>>, vector<8x72xf32>
    %c0_5 = arith.constant 0 : index
    %c0_6 = arith.constant 0 : index
    %3 = vector.load %arg7[%c0_5, %c0_6] : memref<60x1xf32, #tpu.memory_space<vmem>>, vector<8x1xf32>
    %c17_i32 = arith.constant 17 : i32
    %4 = tpu.dynamic_rotate %1 by %c17_i32 dim 1 : vector<8x512xf32>, i32 -> vector<8x512xf32>
    %5 = vector.extract_strided_slice %0 {offsets = [0, 0], sizes = [1, 512], strides = [1, 1]} : vector<9x512xf32> to vector<1x512xf32>
    %6 = vector.broadcast %5 : vector<1x512xf32> to vector<8x512xf32>
    %7 = arith.mulf %4, %6 : vector<8x512xf32>
    %c16_i32 = arith.constant 16 : i32
    %8 = tpu.dynamic_rotate %1 by %c16_i32 dim 1 : vector<8x512xf32>, i32 -> vector<8x512xf32>
    %9 = vector.extract_strided_slice %0 {offsets = [1, 0], sizes = [1, 512], strides = [1, 1]} : vector<9x512xf32> to vector<1x512xf32>
    %10 = vector.broadcast %9 : vector<1x512xf32> to vector<8x512xf32>
    %11 = arith.mulf %8, %10 : vector<8x512xf32>
    %c15_i32 = arith.constant 15 : i32
    %12 = tpu.dynamic_rotate %1 by %c15_i32 dim 1 : vector<8x512xf32>, i32 -> vector<8x512xf32>
    %13 = vector.extract_strided_slice %0 {offsets = [2, 0], sizes = [1, 512], strides = [1, 1]} : vector<9x512xf32> to vector<1x512xf32>
    %14 = vector.broadcast %13 : vector<1x512xf32> to vector<8x512xf32>
    %15 = arith.mulf %12, %14 : vector<8x512xf32>
    %c1_i32 = arith.constant 1 : i32
    %16 = tpu.dynamic_rotate %1 by %c1_i32 dim 1 : vector<8x512xf32>, i32 -> vector<8x512xf32>
    %17 = vector.extract_strided_slice %0 {offsets = [3, 0], sizes = [1, 512], strides = [1, 1]} : vector<9x512xf32> to vector<1x512xf32>
    %18 = vector.broadcast %17 : vector<1x512xf32> to vector<8x512xf32>
    %19 = arith.mulf %16, %18 : vector<8x512xf32>
    %c511_i32 = arith.constant 511 : i32
    %20 = tpu.dynamic_rotate %1 by %c511_i32 dim 1 : vector<8x512xf32>, i32 -> vector<8x512xf32>
    %21 = vector.extract_strided_slice %0 {offsets = [5, 0], sizes = [1, 512], strides = [1, 1]} : vector<9x512xf32> to vector<1x512xf32>
    %22 = vector.broadcast %21 : vector<1x512xf32> to vector<8x512xf32>
    %23 = arith.mulf %20, %22 : vector<8x512xf32>
    %c497_i32 = arith.constant 497 : i32
    %24 = tpu.dynamic_rotate %1 by %c497_i32 dim 1 : vector<8x512xf32>, i32 -> vector<8x512xf32>
    %25 = vector.extract_strided_slice %0 {offsets = [6, 0], sizes = [1, 512], strides = [1, 1]} : vector<9x512xf32> to vector<1x512xf32>
    %26 = vector.broadcast %25 : vector<1x512xf32> to vector<8x512xf32>
    %27 = arith.mulf %24, %26 : vector<8x512xf32>
    %c496_i32 = arith.constant 496 : i32
    %28 = tpu.dynamic_rotate %1 by %c496_i32 dim 1 : vector<8x512xf32>, i32 -> vector<8x512xf32>
    %29 = vector.extract_strided_slice %0 {offsets = [7, 0], sizes = [1, 512], strides = [1, 1]} : vector<9x512xf32> to vector<1x512xf32>
    %30 = vector.broadcast %29 : vector<1x512xf32> to vector<8x512xf32>
    %31 = arith.mulf %28, %30 : vector<8x512xf32>
    %c495_i32 = arith.constant 495 : i32
    %32 = tpu.dynamic_rotate %1 by %c495_i32 dim 1 : vector<8x512xf32>, i32 -> vector<8x512xf32>
    %33 = vector.extract_strided_slice %0 {offsets = [8, 0], sizes = [1, 512], strides = [1, 1]} : vector<9x512xf32> to vector<1x512xf32>
    %34 = vector.broadcast %33 : vector<1x512xf32> to vector<8x512xf32>
    %35 = arith.mulf %32, %34 : vector<8x512xf32>
    %36 = tpu.concatenate %7, %11, %15, %19, %1, %23, %27, %31, %35 in 0 : vector<8x512xf32>, vector<8x512xf32>, vector<8x512xf32>, vector<8x512xf32>, vector<8x512xf32>, vector<8x512xf32>, vector<8x512xf32>, vector<8x512xf32>, vector<8x512xf32> -> vector<72x512xf32>
    %cst = arith.constant dense<0.000000e+00> : vector<8x512xf32>
    %37 = tpu.matmul %2, %36, %cst {dimension_numbers = #tpu.dot_dimension_numbers<[1], [0], [0], [1], [0, 0, 1, 1], [], []>} : vector<8x72xf32>, vector<72x512xf32>, vector<8x512xf32> -> vector<8x512xf32>
    %38 = vector.broadcast %3 : vector<8x1xf32> to vector<8x512xf32>
    %39 = arith.addf %37, %38 : vector<8x512xf32>
    %cst_7 = arith.constant 0.000000e+00 : f32
    %40 = vector.broadcast %cst_7 : f32 to vector<8x512xf32>
    %41 = arith.maximumf %39, %40 : vector<8x512xf32>
    %c0_8 = arith.constant 0 : index
    %c0_9 = arith.constant 0 : index
    %42 = vector.load %arg4[%c0_8, %c0_9] : memref<16x72xf32, #tpu.memory_space<vmem>>, vector<16x72xf32>
    %c8 = arith.constant 8 : index
    %c0_10 = arith.constant 0 : index
    %43 = vector.load %arg7[%c8, %c0_10] : memref<60x1xf32, #tpu.memory_space<vmem>>, vector<16x1xf32>
    %c17_i32_11 = arith.constant 17 : i32
    %44 = tpu.dynamic_rotate %41 by %c17_i32_11 dim 1 : vector<8x512xf32>, i32 -> vector<8x512xf32>
    %45 = vector.extract_strided_slice %0 {offsets = [0, 0], sizes = [1, 512], strides = [1, 1]} : vector<9x512xf32> to vector<1x512xf32>
    %46 = vector.broadcast %45 : vector<1x512xf32> to vector<8x512xf32>
    %47 = arith.mulf %44, %46 : vector<8x512xf32>
    %c16_i32_12 = arith.constant 16 : i32
    %48 = tpu.dynamic_rotate %41 by %c16_i32_12 dim 1 : vector<8x512xf32>, i32 -> vector<8x512xf32>
    %49 = vector.extract_strided_slice %0 {offsets = [1, 0], sizes = [1, 512], strides = [1, 1]} : vector<9x512xf32> to vector<1x512xf32>
    %50 = vector.broadcast %49 : vector<1x512xf32> to vector<8x512xf32>
    %51 = arith.mulf %48, %50 : vector<8x512xf32>
    %c15_i32_13 = arith.constant 15 : i32
    %52 = tpu.dynamic_rotate %41 by %c15_i32_13 dim 1 : vector<8x512xf32>, i32 -> vector<8x512xf32>
    %53 = vector.extract_strided_slice %0 {offsets = [2, 0], sizes = [1, 512], strides = [1, 1]} : vector<9x512xf32> to vector<1x512xf32>
    %54 = vector.broadcast %53 : vector<1x512xf32> to vector<8x512xf32>
    %55 = arith.mulf %52, %54 : vector<8x512xf32>
    %c1_i32_14 = arith.constant 1 : i32
    %56 = tpu.dynamic_rotate %41 by %c1_i32_14 dim 1 : vector<8x512xf32>, i32 -> vector<8x512xf32>
    %57 = vector.extract_strided_slice %0 {offsets = [3, 0], sizes = [1, 512], strides = [1, 1]} : vector<9x512xf32> to vector<1x512xf32>
    %58 = vector.broadcast %57 : vector<1x512xf32> to vector<8x512xf32>
    %59 = arith.mulf %56, %58 : vector<8x512xf32>
    %c511_i32_15 = arith.constant 511 : i32
    %60 = tpu.dynamic_rotate %41 by %c511_i32_15 dim 1 : vector<8x512xf32>, i32 -> vector<8x512xf32>
    %61 = vector.extract_strided_slice %0 {offsets = [5, 0], sizes = [1, 512], strides = [1, 1]} : vector<9x512xf32> to vector<1x512xf32>
    %62 = vector.broadcast %61 : vector<1x512xf32> to vector<8x512xf32>
    %63 = arith.mulf %60, %62 : vector<8x512xf32>
    %c497_i32_16 = arith.constant 497 : i32
    %64 = tpu.dynamic_rotate %41 by %c497_i32_16 dim 1 : vector<8x512xf32>, i32 -> vector<8x512xf32>
    %65 = vector.extract_strided_slice %0 {offsets = [6, 0], sizes = [1, 512], strides = [1, 1]} : vector<9x512xf32> to vector<1x512xf32>
    %66 = vector.broadcast %65 : vector<1x512xf32> to vector<8x512xf32>
    %67 = arith.mulf %64, %66 : vector<8x512xf32>
    %c496_i32_17 = arith.constant 496 : i32
    %68 = tpu.dynamic_rotate %41 by %c496_i32_17 dim 1 : vector<8x512xf32>, i32 -> vector<8x512xf32>
    %69 = vector.extract_strided_slice %0 {offsets = [7, 0], sizes = [1, 512], strides = [1, 1]} : vector<9x512xf32> to vector<1x512xf32>
    %70 = vector.broadcast %69 : vector<1x512xf32> to vector<8x512xf32>
    %71 = arith.mulf %68, %70 : vector<8x512xf32>
    %c495_i32_18 = arith.constant 495 : i32
    %72 = tpu.dynamic_rotate %41 by %c495_i32_18 dim 1 : vector<8x512xf32>, i32 -> vector<8x512xf32>
    %73 = vector.extract_strided_slice %0 {offsets = [8, 0], sizes = [1, 512], strides = [1, 1]} : vector<9x512xf32> to vector<1x512xf32>
    %74 = vector.broadcast %73 : vector<1x512xf32> to vector<8x512xf32>
    %75 = arith.mulf %72, %74 : vector<8x512xf32>
    %76 = tpu.concatenate %47, %51, %55, %59, %41, %63, %67, %71, %75 in 0 : vector<8x512xf32>, vector<8x512xf32>, vector<8x512xf32>, vector<8x512xf32>, vector<8x512xf32>, vector<8x512xf32>, vector<8x512xf32>, vector<8x512xf32>, vector<8x512xf32> -> vector<72x512xf32>
    %cst_19 = arith.constant dense<0.000000e+00> : vector<16x512xf32>
    %77 = tpu.matmul %42, %76, %cst_19 {dimension_numbers = #tpu.dot_dimension_numbers<[1], [0], [0], [1], [0, 0, 1, 1], [], []>} : vector<16x72xf32>, vector<72x512xf32>, vector<16x512xf32> -> vector<16x512xf32>
    %78 = vector.broadcast %43 : vector<16x1xf32> to vector<16x512xf32>
    %79 = arith.addf %77, %78 : vector<16x512xf32>
    %cst_20 = arith.constant 0.000000e+00 : f32
    %80 = vector.broadcast %cst_20 : f32 to vector<16x512xf32>
    %81 = arith.maximumf %79, %80 : vector<16x512xf32>
    %c0_21 = arith.constant 0 : index
    %c0_22 = arith.constant 0 : index
    %82 = vector.load %arg5[%c0_21, %c0_22] : memref<32x144xf32, #tpu.memory_space<vmem>>, vector<32x144xf32>
    %c24 = arith.constant 24 : index
    %c0_23 = arith.constant 0 : index
    %83 = vector.load %arg7[%c24, %c0_23] : memref<60x1xf32, #tpu.memory_space<vmem>>, vector<32x1xf32>
    %c17_i32_24 = arith.constant 17 : i32
    %84 = tpu.dynamic_rotate %81 by %c17_i32_24 dim 1 : vector<16x512xf32>, i32 -> vector<16x512xf32>
    %85 = vector.extract_strided_slice %0 {offsets = [0, 0], sizes = [1, 512], strides = [1, 1]} : vector<9x512xf32> to vector<1x512xf32>
    %86 = vector.broadcast %85 : vector<1x512xf32> to vector<16x512xf32>
    %87 = arith.mulf %84, %86 : vector<16x512xf32>
    %c16_i32_25 = arith.constant 16 : i32
    %88 = tpu.dynamic_rotate %81 by %c16_i32_25 dim 1 : vector<16x512xf32>, i32 -> vector<16x512xf32>
    %89 = vector.extract_strided_slice %0 {offsets = [1, 0], sizes = [1, 512], strides = [1, 1]} : vector<9x512xf32> to vector<1x512xf32>
    %90 = vector.broadcast %89 : vector<1x512xf32> to vector<16x512xf32>
    %91 = arith.mulf %88, %90 : vector<16x512xf32>
    %c15_i32_26 = arith.constant 15 : i32
    %92 = tpu.dynamic_rotate %81 by %c15_i32_26 dim 1 : vector<16x512xf32>, i32 -> vector<16x512xf32>
    %93 = vector.extract_strided_slice %0 {offsets = [2, 0], sizes = [1, 512], strides = [1, 1]} : vector<9x512xf32> to vector<1x512xf32>
    %94 = vector.broadcast %93 : vector<1x512xf32> to vector<16x512xf32>
    %95 = arith.mulf %92, %94 : vector<16x512xf32>
    %c1_i32_27 = arith.constant 1 : i32
    %96 = tpu.dynamic_rotate %81 by %c1_i32_27 dim 1 : vector<16x512xf32>, i32 -> vector<16x512xf32>
    %97 = vector.extract_strided_slice %0 {offsets = [3, 0], sizes = [1, 512], strides = [1, 1]} : vector<9x512xf32> to vector<1x512xf32>
    %98 = vector.broadcast %97 : vector<1x512xf32> to vector<16x512xf32>
    %99 = arith.mulf %96, %98 : vector<16x512xf32>
    %c511_i32_28 = arith.constant 511 : i32
    %100 = tpu.dynamic_rotate %81 by %c511_i32_28 dim 1 : vector<16x512xf32>, i32 -> vector<16x512xf32>
    %101 = vector.extract_strided_slice %0 {offsets = [5, 0], sizes = [1, 512], strides = [1, 1]} : vector<9x512xf32> to vector<1x512xf32>
    %102 = vector.broadcast %101 : vector<1x512xf32> to vector<16x512xf32>
    %103 = arith.mulf %100, %102 : vector<16x512xf32>
    %c497_i32_29 = arith.constant 497 : i32
    %104 = tpu.dynamic_rotate %81 by %c497_i32_29 dim 1 : vector<16x512xf32>, i32 -> vector<16x512xf32>
    %105 = vector.extract_strided_slice %0 {offsets = [6, 0], sizes = [1, 512], strides = [1, 1]} : vector<9x512xf32> to vector<1x512xf32>
    %106 = vector.broadcast %105 : vector<1x512xf32> to vector<16x512xf32>
    %107 = arith.mulf %104, %106 : vector<16x512xf32>
    %c496_i32_30 = arith.constant 496 : i32
    %108 = tpu.dynamic_rotate %81 by %c496_i32_30 dim 1 : vector<16x512xf32>, i32 -> vector<16x512xf32>
    %109 = vector.extract_strided_slice %0 {offsets = [7, 0], sizes = [1, 512], strides = [1, 1]} : vector<9x512xf32> to vector<1x512xf32>
    %110 = vector.broadcast %109 : vector<1x512xf32> to vector<16x512xf32>
    %111 = arith.mulf %108, %110 : vector<16x512xf32>
    %c495_i32_31 = arith.constant 495 : i32
    %112 = tpu.dynamic_rotate %81 by %c495_i32_31 dim 1 : vector<16x512xf32>, i32 -> vector<16x512xf32>
    %113 = vector.extract_strided_slice %0 {offsets = [8, 0], sizes = [1, 512], strides = [1, 1]} : vector<9x512xf32> to vector<1x512xf32>
    %114 = vector.broadcast %113 : vector<1x512xf32> to vector<16x512xf32>
    %115 = arith.mulf %112, %114 : vector<16x512xf32>
    %116 = tpu.concatenate %87, %91, %95, %99, %81, %103, %107, %111, %115 in 0 : vector<16x512xf32>, vector<16x512xf32>, vector<16x512xf32>, vector<16x512xf32>, vector<16x512xf32>, vector<16x512xf32>, vector<16x512xf32>, vector<16x512xf32>, vector<16x512xf32> -> vector<144x512xf32>
    %cst_32 = arith.constant dense<0.000000e+00> : vector<32x512xf32>
    %117 = tpu.matmul %82, %116, %cst_32 {dimension_numbers = #tpu.dot_dimension_numbers<[1], [0], [0], [1], [0, 0, 1, 1], [], []>} : vector<32x144xf32>, vector<144x512xf32>, vector<32x512xf32> -> vector<32x512xf32>
    %118 = vector.broadcast %83 : vector<32x1xf32> to vector<32x512xf32>
    %119 = arith.addf %117, %118 : vector<32x512xf32>
    %cst_33 = arith.constant 0.000000e+00 : f32
    %120 = vector.broadcast %cst_33 : f32 to vector<32x512xf32>
    %121 = arith.maximumf %119, %120 : vector<32x512xf32>
    %c0_34 = arith.constant 0 : index
    %c0_35 = arith.constant 0 : index
    %122 = vector.load %arg6[%c0_34, %c0_35] : memref<4x32xf32, #tpu.memory_space<vmem>>, vector<4x32xf32>
    %c56 = arith.constant 56 : index
    %c0_36 = arith.constant 0 : index
    %123 = vector.load %arg7[%c56, %c0_36] : memref<60x1xf32, #tpu.memory_space<vmem>>, vector<4x1xf32>
    %cst_37 = arith.constant dense<0.000000e+00> : vector<4x512xf32>
    %124 = tpu.matmul %122, %121, %cst_37 {dimension_numbers = #tpu.dot_dimension_numbers<[1], [0], [0], [1], [0, 0, 1, 1], [], []>} : vector<4x32xf32>, vector<32x512xf32>, vector<4x512xf32> -> vector<4x512xf32>
    %125 = vector.broadcast %123 : vector<4x1xf32> to vector<4x512xf32>
    %126 = arith.addf %124, %125 : vector<4x512xf32>
    %cst_38 = arith.constant 0.000000e+00 : f32
    %127 = vector.broadcast %cst_38 : f32 to vector<4x512xf32>
    %128 = arith.maximumf %126, %127 : vector<4x512xf32>
    %c0_39 = arith.constant 0 : index
    %c0_40 = arith.constant 0 : index
    %129 = vector.load %arg8[%c0_39, %c0_40] : memref<4x512xf32, #tpu.memory_space<vmem>>, vector<4x512xf32>
    tpu.vector_store %arg8[%c0_39, %c0_40], %128 {strides = array<i32>} : memref<4x512xf32, #tpu.memory_space<vmem>>, vector<4x512xf32>,
    return
  }
  func.func @transform_0(%arg0: i32) -> (i32, i32) {
    %c0_i32 = arith.constant 0 : i32
    %c0_i32_0 = arith.constant 0 : i32
    return %c0_i32, %arg0 : i32, i32
  }
  func.func @transform_1(%arg0: i32) -> (i32, i32) {
    %c0_i32 = arith.constant 0 : i32
    %c0_i32_0 = arith.constant 0 : i32
    %c0_i32_1 = arith.constant 0 : i32
    return %c0_i32, %c0_i32_0 : i32, i32
  }
  func.func @transform_2(%arg0: i32) -> (i32, i32) {
    %c0_i32 = arith.constant 0 : i32
    %c0_i32_0 = arith.constant 0 : i32
    %c0_i32_1 = arith.constant 0 : i32
    return %c0_i32, %c0_i32_0 : i32, i32
  }
  func.func @transform_3(%arg0: i32) -> (i32, i32) {
    %c0_i32 = arith.constant 0 : i32
    %c0_i32_0 = arith.constant 0 : i32
    %c0_i32_1 = arith.constant 0 : i32
    return %c0_i32, %c0_i32_0 : i32, i32
  }
  func.func @transform_4(%arg0: i32) -> (i32, i32) {
    %c0_i32 = arith.constant 0 : i32
    %c0_i32_0 = arith.constant 0 : i32
    %c0_i32_1 = arith.constant 0 : i32
    return %c0_i32, %c0_i32_0 : i32, i32
  }
  func.func @transform_5(%arg0: i32) -> (i32, i32) {
    %c0_i32 = arith.constant 0 : i32
    %c0_i32_0 = arith.constant 0 : i32
    %c0_i32_1 = arith.constant 0 : i32
    return %c0_i32, %c0_i32_0 : i32, i32
  }
  func.func @transform_6(%arg0: i32) -> (i32, i32) {
    %c0_i32 = arith.constant 0 : i32
    %c0_i32_0 = arith.constant 0 : i32
    %c0_i32_1 = arith.constant 0 : i32
    return %c0_i32, %c0_i32_0 : i32, i32
  }
  func.func @transform_7(%arg0: i32) -> (i32, i32) {
    %c0_i32 = arith.constant 0 : i32
    %c0_i32_0 = arith.constant 0 : i32
    return %c0_i32, %arg0 : i32, i32
  }
}

</mosaic_0001>

<bundles_post_ra>
// kernel: tpu_custom_call.1
= control target key start
LH: loop header
LB: loop body
LE: loop exit
PB: predicated region body
PF: predicated region fallthrough
CT: control target
= control target key end

     0   :  { %12 = vsyncpa [#allocation3], 0  ;;  %s2806_s0 = inlined_call_operand.hbm [shape: f32[8,512], index: 0, kind: input, shape index: {}]   ;;  %s2807_s1 = inlined_call_operand.vmem [shape: f32[9,512], index: 1, kind: input, shape index: {}]   ;;  %s2808_s2 = inlined_call_operand.hbm [shape: f32[8,72], index: 2, kind: input, shape index: {}]   ;;  %s2809_s3 = inlined_call_operand.hbm [shape: f32[16,72], index: 3, kind: input, shape index: {}]   ;;  %s2810_s4 = inlined_call_operand.hbm [shape: f32[32,144], index: 4, kind: input, shape index: {}]   ;;  %s2811_s5 = inlined_call_operand.hbm [shape: f32[4,32], index: 5, kind: input, shape index: {}]   ;;  %s2812_s6 = inlined_call_operand.vmem [shape: f32[60,1], index: 6, kind: input, shape index: {}]   ;;  %s2813_s7 = inlined_call_operand.hbm [shape: f32[4,512], index: 7, kind: output, shape index: {}]  }
   0x1   :  { %13 = vsyncpa [#allocation6], 0 }
   0x2   :  { %14 = vsyncpa [#allocation9], 0  ;;  %s34_s26 = sshll.u32 %s2808_s2, 4  ;;  %s35_s26 = int_to_ptr.hbm [resolvable:$true] %s34_s26 }
   0x3   :  { %15 = vsyncpa [#allocation4], 0  ;;  %s1512_s27 = smov [#allocation5]   ;;  %s57_s8 = sshll.u32 %s2810_s4, 4  ;;  %s58_s8 = int_to_ptr.hbm [resolvable:$true] %s57_s8 }
   0x4   :  { %s36_s28 = sshll.u32 %s1512_s27, 4  ;;  %s1513_s9 = smov [#allocation8]   ;;  %s37_s28 = int_to_ptr.vmem [resolvable:$true] %s36_s28 }
   0x5   :  { %39 = dma.hbm_to_vmem [thread:$0]  %s35_s26, 128, %s37_s28, [#allocation6]  }
   0x6   :  { %s59_s10 = sshll.u32 %s1513_s9, 4  ;;  %s1514_s11 = smov 256   ;;  %s60_s10 = int_to_ptr.vmem [resolvable:$true] %s59_s10 }
   0x7   :  { %s1515_s12 = smov 16   ;;  %s21_s14 = sshll.u32 %s2806_s0, 4  ;;  %s22_s14 = int_to_ptr.hbm [resolvable:$true] %s21_s14 }
   0x8   :  { %65 = dma.hbm_to_vmem [thread:$0]  %s58_s8, 1024, %s60_s10, [#allocation9], %s1514_s11, %s1514_s11, %s1515_s12  }
   0x9   :  { %s1516_s15 = smov [#allocation2]   ;;  %s44_s4 = sshll.u32 %s2809_s3, 4  ;;  %s45_s4 = int_to_ptr.hbm [resolvable:$true] %s44_s4 }
   0xa   :  { %s23_s16 = sshll.u32 %s1516_s15, 4  ;;  %s1517_s19 = smov [#allocation7]   ;;  %s24_s16 = int_to_ptr.vmem [resolvable:$true] %s23_s16 }
   0xb   :  { %26 = dma.hbm_to_vmem [thread:$0]  %s22_s14, 512, %s24_s16, [#allocation3]  }
   0xc   :  { %s46_s20 = sshll.u32 %s1517_s19, 4  ;;  %s1518_s21 = smov 128   ;;  %s47_s20 = int_to_ptr.vmem [resolvable:$true] %s46_s20 }
   0xd   :  { %s1519_s22 = smov 8   ;;  %s71_s0 = sshll.u32 %s2811_s5, 4  ;;  %s72_s0 = int_to_ptr.hbm [resolvable:$true] %s71_s0 }
   0xe   :  { %52 = dma.hbm_to_vmem [thread:$0]  %s45_s4, 256, %s47_s20, [#allocation6], %s1518_s21, %s1518_s21, %s1519_s22  }
   0xf   :  { %s1520_s25 = smov [#allocation10]  }
  0x10   :  { %s73_s26 = sshll.u32 %s1520_s25, 4  ;;  %s74_s26 = int_to_ptr.vmem [resolvable:$true] %s73_s26 }
  0x11   :  { %76 = dma.hbm_to_vmem [thread:$0]  %s72_s0, 64, %s74_s26, [#allocation9]  }
  0x12   :  { %1504 = dma.done.wait [#allocation3], 512  }
  0x13   :  { %1505 = vsyncadd [#allocation3], 4294966784 }
  0x14   :  { %1506 = dma.done.wait [#allocation6], 384  }
  0x15   :  { %1507 = vsyncadd [#allocation6], 4294966912 }
  0x16   :  { %1508 = dma.done.wait [#allocation9], 1088  }
  0x17   :  { %1509 = vsyncadd [#allocation9], 4294966208  ;;  %v1586_v0 = vld [vmem:[#allocation2 + $0x18] sm:$0xff]  ;;  %v1588_v1 = vld [vmem:[#allocation2 + $0x10] sm:$0xff]  ;;  %s1521_s3 = smov 111   ;;  %s1522_s5 = smov 112   ;;  %v121_v6 = vlaneseq }
  0x18   :  { %v1590_v2 = vld [vmem:[#allocation2] sm:$0xff]  ;;  %268 = vrot.lane.b32.xlu1 %v1586_v0, %s1521_s3  ;;  %245 = vrot.lane.b32.xlu2 %v1588_v1, %s1522_s5  ;;  %s1523_s27 = smov 113   ;;  %s1524_s28 = smov 127   ;;  %v1616_v3 = vld [vmem:[#allocation2 + $0x8] sm:$0xff]  ;;  %v1666_v9 = vld [vmem:[%s2807_s1 + $0x38] ss:$0 sm:$0xff] }
  0x19   :  { %262 = vrot.lane.b32.xlu0 %v1590_v2, %s1521_s3  ;;  %s1525_s29 = smov 1   ;;  %s1526_s30 = smov 15   ;;  %v1660_v8 = vand.u32 127, %v121_v6  ;;  %v1677_v15 = vld [vmem:[%s2807_s1 + $0x18] sm:$0xff]  ;;  %v1682_v16 = vld [vmem:[%s2807_s1 + $0x10] sm:$0xff]  ;;  %vm288_vm8 = vcmask 588800  }
  0x1a   :  { %s1527_s8 = smov 17   ;;  %v1685_v17 = vperm.slane %v1677_v15, 7  ;;  %v1691_v18 = vld [vmem:[%s2807_s1 + $0x30] ss:$0 sm:$0xff]  ;;  %v1701_v22 = vperm.slane %v1682_v16, 7  ;;  %v1715_v29 = vperm.slane %v1682_v16, 6 }
  0x1b   :  { %vm270_vm0 = vcmp.lt.s32.totalorder %v1660_v8, 111  ;;  %vm249_vm1 = vcmp.lt.s32.totalorder %v1660_v8, 112  ;;  %vm228_vm2 = vcmp.lt.s32.totalorder %v1660_v8, 113  ;;  %v1719_v30 = vperm.slane %v1677_v15, 6  ;;  %s1288_s20 = sshll.u32 %s2813_s7, 4  ;;  %s1289_s20 = int_to_ptr.hbm [resolvable:$true] %s1288_s20 }
  0x1c   :  { %v1734_v37 = vperm.slane %v1682_v16, 5  ;;  %vm207_vm3 = vcmp.lt.s32.totalorder %v1660_v8, 127  ;;  %v1740_v39 = vperm.slane %v1677_v15, 5  ;;  %v1756_v46 = vperm.slane %v1677_v15, 3 }
  0x1d   :  { %vm186_vm4 = vcmp.lt.s32.totalorder %v1660_v8, 1  ;;  %v1760_v47 = vperm.slane %v1682_v16, 3  ;;  %v1774_v55 = vperm.slane %v1677_v15, 2  ;;  %vm165_vm5 = vcmp.lt.s32.totalorder %v1660_v8, 15 }
  0x1e   :  { %2844 = vst [vmem:[#allocation16_spill] sm:$0xff] %v1734_v37  ;;  %v1778_v56 = vperm.slane %v1682_v16, 2  ;;  %vm144_vm6 = vcmp.lt.s32.totalorder %v1660_v8, 16  ;;  %vm123_vm7 = vcmp.lt.s32.totalorder %v1660_v8, 17  ;;  %vm912_vm9 = vcmask 130048  }
  0x1f   :  { %2845 = vst [vmem:[#allocation17_spill] sm:$0xff] %v1740_v39  ;;  %vm1180_vm10 = vcmask 261120   ;;  %vm1274_vm11 = vcmask 1043456  }
  0x20   :  { %247 = vrot.lane.b32.xlu2 %v1586_v0, %s1522_s5  ;;  %241 = vrot.lane.b32.xlu1 %v1590_v2, %s1522_s5  ;;  %2846 = vst [vmem:[#allocation18_spill] sm:$0xff] %v1756_v46 }
  0x21   :  { %266 = vrot.lane.b32.xlu0 %v1588_v1, %s1521_s3  ;;  %2847 = vst [vmem:[#allocation19_spill] sm:$0xff] %v1760_v47 }
  0x22   :  { %2848 = vst [vmem:[#allocation20_spill] sm:$0xff] %v1774_v55 }
  0x23   :  { %2849 = vst [vmem:[#allocation21_spill] sm:$0xff] %v1778_v56 }
  0x28   :  { %226 = vrot.lane.b32.xlu2 %v1586_v0, %s1523_s27  ;;  %224 = vrot.lane.b32.xlu1 %v1588_v1, %s1523_s27 }
  0x29   :  { %220 = vrot.lane.b32.xlu0 %v1590_v2, %s1523_s27 }
  0x30   :  { %205 = vrot.lane.b32.xlu2 %v1586_v0, %s1524_s28  ;;  %203 = vrot.lane.b32.xlu1 %v1588_v1, %s1524_s28 }
  0x31   :  { %199 = vrot.lane.b32.xlu0 %v1590_v2, %s1524_s28 }
  0x38   :  { %184 = vrot.lane.b32.xlu2 %v1586_v0, %s1525_s29  ;;  %182 = vrot.lane.b32.xlu1 %v1588_v1, %s1525_s29 }
  0x39   :  { %180 = vrot.lane.b32.xlu0 %v1616_v3, %s1525_s29 }
  0x40   :  { %163 = vrot.lane.b32.xlu2 %v1586_v0, %s1526_s30  ;;  %161 = vrot.lane.b32.xlu1 %v1588_v1, %s1526_s30 }
  0x41   :  { %159 = vrot.lane.b32.xlu0 %v1616_v3, %s1526_s30 }
  0x48   :  { %140 = vrot.lane.b32.xlu2 %v1588_v1, %s1515_s12  ;;  %138 = vrot.lane.b32.xlu1 %v1616_v3, %s1515_s12 }
  0x49   :  { %264 = vrot.lane.b32.xlu0 %v1616_v3, %s1521_s3 }
  0x50   :  { %115 = vrot.lane.b32.xlu2 %v1616_v3, %s1527_s8  ;;  %243 = vrot.lane.b32.xlu1 %v1616_v3, %s1522_s5 }
  0x51   :  { %142 = vrot.lane.b32.xlu0 %v1586_v0, %s1515_s12 }
  0x58   :  { %222 = vrot.lane.b32.xlu2 %v1616_v3, %s1523_s27  ;;  %119 = vrot.lane.b32.xlu1 %v1586_v0, %s1527_s8 }
  0x59   :  { %117 = vrot.lane.b32.xlu0 %v1588_v1, %s1527_s8 }
  0x60   :  { %157 = vrot.lane.b32.xlu2 %v1590_v2, %s1526_s30  ;;  %178 = vrot.lane.b32.xlu1 %v1590_v2, %s1525_s29 }
  0x61   :  { %201 = vrot.lane.b32.xlu0 %v1616_v3, %s1524_s28 }
  0x68   :  { %113 = vrot.lane.b32.xlu1 %v1590_v2, %s1527_s8 }
  0x69   :  { %136 = vrot.lane.b32.xlu0 %v1590_v2, %s1515_s12 }
  0x72   :  { %v1658_v4 = vpop.permute.xlu2 %245 }
  0x7a   :  { %v248_v5 = vpop.permute.xlu2 %247 }
  0x7b   :  { %v250_v23 = vsel %vm249_vm1, %v1658_v4, %v248_v5 }
  0x7c   :  { %v260_v28 = vmul.f32 %v1701_v22, %v250_v23 }
  0x82   :  { %v227_v7 = vpop.permute.xlu2 %226 }
  0x8a   :  { %v269_v10 = vpop.permute.xlu1 %268  ;;  %v206_v13 = vpop.permute.xlu2 %205 }
  0x8b   :  { %v1668_v11 = vpop.permute.xlu0 %262 }
  0x8c   :  { %v274_v12 = vsel %vm270_vm0, %v269_v10, %v1668_v11 }
  0x8d   :  { %v282_v14 = vmul.f32 %v1666_v9, %v274_v12 }
  0x8f   :  { %359 = vmatpush.msra.mxu3 %v282_v14 }
  0x92   :  { %v1693_v19 = vpop.permute.xlu1 %241  ;;  %v1711_v27 = vpop.permute.xlu2 %184 }
  0x93   :  { %v253_v20 = vsel %vm249_vm1, %v248_v5, %v1693_v19  ;;  %v1698_v21 = vpop.permute.xlu0 %266  ;;  %v1804_v5 = vld [vmem:[%s2807_s1 + $0x28] ss:$0 sm:$0xff] }
  0x94   :  { %v271_v24 = vsel %vm270_vm0, %v1698_v21, %v269_v10  ;;  %v261_v25 = vmul.f32 %v1685_v17, %v253_v20 }
  0x95   :  { %v281_v26 = vmul.f32 %v1691_v18, %v271_v24 }
  0x96   :  { %360 = vmatpush.msra.mxu3 %v261_v25  ;;  %v1823_v25 = vld [vmem:[%s2807_s1] sm:$0xff] }
  0x97   :  { %339 = vmatpush.msra.mxu2 %v281_v26 }
  0x99   :  { %340 = vmatpush.msra.mxu2 %v260_v28  ;;  %v1837_v28 = vperm.slane %v1677_v15, 1 }
  0x9a   :  { %v1721_v31 = vpop.permute.xlu1 %224  ;;  %v1736_v38 = vpop.permute.xlu2 %163 }
  0x9b   :  { %v229_v32 = vsel %vm228_vm2, %v1721_v31, %v227_v7  ;;  %v1726_v33 = vpop.permute.xlu0 %220  ;;  %2851 = vst [vmem:[#allocation23_spill] sm:$0xff] %v1837_v28 }
  0x9c   :  { %v232_v34 = vsel %vm228_vm2, %v227_v7, %v1726_v33  ;;  %v239_v35 = vmul.f32 %v1715_v29, %v229_v32 }
  0x9d   :  { %v240_v36 = vmul.f32 %v1719_v30, %v232_v34 }
  0x9e   :  { %341 = vmatpush.msra.mxu2 %v239_v35  ;;  %v1843_v35 = vperm.slane %v1823_v25, 6 }
  0x9f   :  { %361 = vmatpush.msra.mxu3 %v240_v36 }
  0xa2   :  { %v1742_v40 = vpop.permute.xlu1 %203  ;;  %v141_v49 = vpop.permute.xlu2 %140 }
  0xa3   :  { %v208_v41 = vsel %vm207_vm3, %v1742_v40, %v206_v13  ;;  %v1747_v42 = vpop.permute.xlu0 %199 }
  0xa4   :  { %v211_v43 = vsel %vm207_vm3, %v206_v13, %v1747_v42  ;;  %v218_v44 = vmul.f32 %v1734_v37, %v208_v41  ;;  %v112_v41 = vld [vmem:[%s2812_s6] sm:$0xff] }
  0xa5   :  { %v219_v45 = vmul.f32 %v1740_v39, %v211_v43 }
  0xa6   :  { %342 = vmatpush.msra.mxu2 %v218_v44 }
  0xa7   :  { %362 = vmatpush.msra.mxu3 %v219_v45 }
  0xa8   :  { %343 = vmatpush.msra.mxu2 %v1588_v1  ;;  %v1799_v1 = vld [vmem:[%s2807_s1 + $0x20] ss:$0 sm:$0xff] }
  0xa9   :  { %363 = vmatpush.msra.mxu3 %v1586_v0  ;;  %v1794_v0 = vperm.slane %v1682_v16, 1 }
  0xaa   :  { %v183_v48 = vpop.permute.xlu1 %182  ;;  %v1789_v62 = vpop.permute.xlu2 %115 }
  0xab   :  { %v187_v50 = vsel %vm186_vm4, %v183_v48, %v1711_v27  ;;  %v1766_v51 = vpop.permute.xlu0 %180  ;;  %2850 = vst [vmem:[#allocation22_spill] sm:$0xff] %v1794_v0 }
  0xac   :  { %v188_v52 = vsel %vm186_vm4, %v1766_v51, %v183_v48  ;;  %v198_v53 = vmul.f32 %v1756_v46, %v187_v50  ;;  %v1528_v48 = vmov 0  }
  0xad   :  { %v197_v54 = vmul.f32 %v1760_v47, %v188_v52  ;;  %1350 = vset.pattern.permute.xlu2 %v1528_v48  ;;  %1351 = vset.pattern.permute.xlu0 %v1528_v48 }
  0xae   :  { %364 = vmatpush.msra.mxu3 %v198_v53  ;;  %285 = vperm.xlu2 %1350, %v112_v41  }
  0xaf   :  { %344 = vmatpush.msra.mxu2 %v197_v54  ;;  %1352 = vset.pattern.permute.xlu1 %v1528_v48  ;;  %v1875_v54 = vperm.slane %v1677_v15, 0  ;;  %v1887_v15 = vperm.slane %v1823_v25, 5 }
  0xb1   :  { %2853 = vst [vmem:[#allocation25_spill] sm:$0xff] %v1875_v54 }
  0xb2   :  { %v162_v57 = vpop.permute.xlu1 %161  ;;  %v223_v24 = vpop.permute.xlu2 %222 }
  0xb3   :  { %v166_v58 = vsel %vm165_vm5, %v162_v57, %v1736_v38  ;;  %v1783_v59 = vpop.permute.xlu0 %159  ;;  %v230_v32 = vsel %vm228_vm2, %v223_v24, %v1721_v31  ;;  %v231_v43 = vsel %vm228_vm2, %v1726_v33, %v223_v24 }
  0xb4   :  { %v167_v60 = vsel %vm165_vm5, %v1783_v59, %v162_v57  ;;  %v177_v61 = vmul.f32 %v1774_v55, %v166_v58 }
  0xb5   :  { %v176_v63 = vmul.f32 %v1778_v56, %v167_v60 }
  0xb6   :  { %365 = vmatpush.msra.mxu3 %v177_v61 }
  0xb7   :  { %345 = vmatpush.msra.mxu2 %v176_v63 }
  0xba   :  { %v1806_v6 = vpop.permute.xlu1 %138 }
  0xbb   :  { %v146_v7 = vsel %vm144_vm6, %v1806_v6, %v141_v49  ;;  %v265_v10 = vpop.permute.xlu0 %264 }
  0xbc   :  { %v273_v12 = vsel %vm270_vm0, %v1668_v11, %v265_v10  ;;  %v272_v13 = vsel %vm270_vm0, %v265_v10, %v1698_v21  ;;  %v155_v14 = vmul.f32 %v1794_v0, %v146_v7  ;;  %v1828_v11 = vld [vmem:[%s2807_s1 + $0x8] sm:$0xff]  ;;  %v1831_v21 = vperm.slane %v1823_v25, 7  ;;  %v111_v10 = vld [vmem:[#allocation5] sm:$0xff] }
  0xbd   :  { %v279_v20 = vmul.f32 %v1799_v1, %v273_v12  ;;  %v280_v23 = vmul.f32 %v1804_v5, %v272_v13  ;;  %v1834_v26 = vperm.slane %v1828_v11, 7  ;;  %v1846_v36 = vperm.slane %v1828_v11, 6 }
  0xbe   :  { %346 = vmatpush.msra.mxu2 %v155_v14  ;;  %v1904_v41 = vperm.slane %v1828_v11, 3 }
  0xbf   :  { %299 = vmatpush.msra.mxu0 %v279_v20  ;;  %319 = vmatpush.msra.mxu1 %v280_v23  ;;  %v238_v53 = vmul.f32 %v1846_v36, %v230_v32  ;;  %v158_v23 = vpop.permute.xlu2 %157 }
  0xc2   :  { %v244_v34 = vpop.permute.xlu1 %243 }
  0xc3   :  { %v251_v44 = vsel %vm249_vm1, %v244_v34, %v1658_v4  ;;  %v252_v31 = vsel %vm249_vm1, %v1693_v19, %v244_v34  ;;  %v1860_v45 = vpop.permute.xlu0 %142  ;;  %v237_v19 = vmul.f32 %v1843_v35, %v231_v43  ;;  %v1901_v34 = vperm.slane %v1823_v25, 3 }
  0xc4   :  { %v145_v50 = vsel %vm144_vm6, %v141_v49, %v1860_v45  ;;  %v258_v52 = vmul.f32 %v1831_v21, %v252_v31  ;;  %v259_v33 = vmul.f32 %v1834_v26, %v251_v44  ;;  %v1872_v49 = vperm.slane %v1682_v16, 0 }
  0xc5   :  { %v156_v4 = vmul.f32 %v1837_v28, %v145_v50  ;;  %v1890_v16 = vperm.slane %v1828_v11, 5  ;;  %v1916_v44 = vperm.slane %v1828_v11, 2  ;;  %v168_v31 = vsel %vm165_vm5, %v158_v23, %v1783_v59 }
  0xc6   :  { %300 = vmatpush.msra.mxu0 %v258_v52  ;;  %320 = vmatpush.msra.mxu1 %v259_v33  ;;  %2852 = vst [vmem:[#allocation24_spill] sm:$0xff] %v1872_v49  ;;  %v1929_v50 = vperm.slane %v1823_v25, 1  ;;  %v1932_v52 = vperm.slane %v1828_v11, 1 }
  0xc7   :  { %366 = vmatpush.msra.mxu3 %v156_v4  ;;  %v1940_v4 = vperm.slane %v1828_v11, 0 }
  0xc8   :  { %301 = vmatpush.msra.mxu0 %v237_v19  ;;  %321 = vmatpush.msra.mxu1 %v238_v53 }
  0xc9   :  { %2854 = vst [vmem:[#allocation26_spill] sm:$0xff] %v1940_v4 }
  0xca   :  { %v120_v57 = vpop.permute.xlu1 %119 }
  0xcb   :  { %v118_v58 = vpop.permute.xlu0 %117 }
  0xcc   :  { %v124_v60 = vsel %vm123_vm7, %v118_v58, %v120_v57  ;;  %v125_v61 = vsel %vm123_vm7, %v1789_v62, %v118_v58 }
  0xcd   :  { %v134_v63 = vmul.f32 %v1872_v49, %v125_v61  ;;  %v135_v7 = vmul.f32 %v1875_v54, %v124_v60 }
  0xcf   :  { %347 = vmatpush.msra.mxu2 %v134_v63  ;;  %367 = vmatpush.msra.mxu3 %v135_v7 }
  0xd0   :  { %1302 = vmatmul.msk.f32.vlgmr.msra.gmra.mxu2 %vm288_vm8, %v111_v10  ;;  %1303 = vmatmul.msk.f32.vlgmr.msra.gmra.mxu3 %vm288_vm8, %v111_v10 }
  0xd2   :  { %v179_v12 = vpop.permute.xlu1 %178 }
  0xd3   :  { %v202_v13 = vpop.permute.xlu0 %201  ;;  %v189_v43 = vsel %vm186_vm4, %v179_v12, %v1766_v51  ;;  %v169_v51 = vsel %vm165_vm5, %v1736_v38, %v158_v23 }
  0xd4   :  { %v209_v14 = vsel %vm207_vm3, %v202_v13, %v1742_v40  ;;  %v210_v20 = vsel %vm207_vm3, %v1747_v42, %v202_v13  ;;  %v190_v40 = vsel %vm186_vm4, %v1711_v27, %v179_v12  ;;  %v1913_v42 = vperm.slane %v1823_v25, 2 }
  0xd5   :  { %v216_v24 = vmul.f32 %v1887_v15, %v210_v20  ;;  %v217_v32 = vmul.f32 %v1890_v16, %v209_v14  ;;  %v195_v27 = vmul.f32 %v1901_v34, %v190_v40  ;;  %v196_v48 = vmul.f32 %v1904_v41, %v189_v43  ;;  %v379_v43 = vld [vmem:[%s2812_s6 + $0x10] sm:$0xff] }
  0xd6   :  { %v174_v38 = vmul.f32 %v1913_v42, %v169_v51 }
  0xd7   :  { %302 = vmatpush.msra.mxu0 %v216_v24  ;;  %322 = vmatpush.msra.mxu1 %v217_v32 }
  0xd9   :  { %303 = vmatpush.msra.mxu0 %v1590_v2  ;;  %323 = vmatpush.msra.mxu1 %v1616_v3  ;;  %v175_v2 = vmul.f32 %v1916_v44, %v168_v31  ;;  %v1937_v3 = vperm.slane %v1823_v25, 0 }
  0xda   :  { %v114_v33 = vpop.permute.xlu1 %113 }
  0xdb   :  { %v137_v59 = vpop.permute.xlu0 %136  ;;  %304 = vmatpush.msra.mxu0 %v195_v27  ;;  %324 = vmatpush.msra.mxu1 %v196_v48  ;;  %v126_v19 = vsel %vm123_vm7, %v114_v33, %v1789_v62  ;;  %v127_v53 = vsel %vm123_vm7, %v120_v57, %v114_v33 }
  0xdc   :  { %v147_v58 = vsel %vm144_vm6, %v137_v59, %v1806_v6  ;;  %v148_v60 = vsel %vm144_vm6, %v1860_v45, %v137_v59  ;;  %v132_v62 = vmul.f32 %v1937_v3, %v127_v53  ;;  %v133_v57 = vmul.f32 %v1940_v4, %v126_v19 }
  0xdd   :  { %305 = vmatpush.msra.mxu0 %v174_v38  ;;  %325 = vmatpush.msra.mxu1 %v175_v2  ;;  %v153_v25 = vmul.f32 %v1929_v50, %v148_v60  ;;  %v154_v11 = vmul.f32 %v1932_v52, %v147_v58 }
  0xdf   :  { %306 = vmatpush.msra.mxu0 %v153_v25  ;;  %326 = vmatpush.msra.mxu1 %v154_v11 }
  0xe1   :  { %307 = vmatpush.msra.mxu0 %v132_v62  ;;  %327 = vmatpush.msra.mxu1 %v133_v57 }
  0xe2   :  { %1300 = vmatmul.msk.f32.vlgmr.msra.gmra.mxu0 %vm288_vm8, %v111_v10  ;;  %1301 = vmatmul.msk.f32.vlgmr.msra.gmra.mxu1 %vm288_vm8, %v111_v10 }
 0x108   :  { %v286_v6 = vpop.permute.xlu2 %285 }
 0x153   :  { %v369_v10 = vpop.f32.mrf.mxu3  ;;  %v349_v23 = vpop.f32.mrf.mxu2 }
 0x154   :  { %v370_v14 = vadd.f32 %v369_v10, %v286_v6  ;;  %v350_v24 = vadd.f32 %v349_v23, %v286_v6 }
 0x156   :  { %v1987_v20 = vmax.f32 %v370_v14, 0.0  ;;  %v1995_v32 = vmax.f32 %v350_v24, 0.0 }
 0x15f   :  { %v329_v45 = vpop.f32.mrf.mxu1  ;;  %v309_v7 = vpop.f32.mrf.mxu0 }
 0x160   :  { %v330_v61 = vadd.f32 %v329_v45, %v286_v6  ;;  %v310_v12 = vadd.f32 %v309_v7, %v286_v6 }
 0x162   :  { %v1959_v63 = vmax.f32 %v330_v61, 0.0  ;;  %v1967_v13 = vmax.f32 %v310_v12, 0.0 }
 0x164   :  { %430 = vrot.lane.b32.xlu1 %v1959_v63, %s1525_s29  ;;  %478 = vrot.lane.b32.xlu0 %v1959_v63, %s1522_s5 }
 0x165   :  { %494 = vrot.lane.b32.xlu2 %v1959_v63, %s1521_s3 }
 0x16c   :  { %462 = vrot.lane.b32.xlu0 %v1959_v63, %s1523_s27  ;;  %492 = vrot.lane.b32.xlu1 %v1967_v13, %s1521_s3 }
 0x16d   :  { %414 = vrot.lane.b32.xlu2 %v1959_v63, %s1526_s30 }
 0x174   :  { %398 = vrot.lane.b32.xlu0 %v1959_v63, %s1515_s12  ;;  %446 = vrot.lane.b32.xlu1 %v1959_v63, %s1524_s28 }
 0x175   :  { %476 = vrot.lane.b32.xlu2 %v1967_v13, %s1522_s5 }
 0x17c   :  { %382 = vrot.lane.b32.xlu0 %v1959_v63, %s1527_s8  ;;  %412 = vrot.lane.b32.xlu1 %v1967_v13, %s1526_s30 }
 0x17d   :  { %460 = vrot.lane.b32.xlu2 %v1967_v13, %s1523_s27 }
 0x184   :  { %444 = vrot.lane.b32.xlu0 %v1967_v13, %s1524_s28  ;;  %498 = vrot.lane.b32.xlu1 %v1987_v20, %s1521_s3 }
 0x185   :  { %428 = vrot.lane.b32.xlu2 %v1967_v13, %s1525_s29 }
 0x18c   :  { %496 = vrot.lane.b32.xlu0 %v1995_v32, %s1521_s3  ;;  %464 = vrot.lane.b32.xlu1 %v1995_v32, %s1523_s27 }
 0x18d   :  { %480 = vrot.lane.b32.xlu2 %v1995_v32, %s1522_s5 }
 0x194   :  { %482 = vrot.lane.b32.xlu0 %v1987_v20, %s1522_s5  ;;  %450 = vrot.lane.b32.xlu1 %v1987_v20, %s1524_s28 }
 0x195   :  { %466 = vrot.lane.b32.xlu2 %v1987_v20, %s1523_s27 }
 0x19c   :  { %448 = vrot.lane.b32.xlu0 %v1995_v32, %s1524_s28  ;;  %400 = vrot.lane.b32.xlu1 %v1995_v32, %s1515_s12 }
 0x19d   :  { %432 = vrot.lane.b32.xlu2 %v1995_v32, %s1525_s29 }
 0x1a4   :  { %416 = vrot.lane.b32.xlu0 %v1995_v32, %s1526_s30  ;;  %384 = vrot.lane.b32.xlu1 %v1995_v32, %s1527_s8 }
 0x1a5   :  { %396 = vrot.lane.b32.xlu2 %v1967_v13, %s1515_s12 }
 0x1ac   :  { %434 = vrot.lane.b32.xlu0 %v1987_v20, %s1525_s29  ;;  %380 = vrot.lane.b32.xlu1 %v1967_v13, %s1527_s8 }
 0x1ad   :  { %418 = vrot.lane.b32.xlu2 %v1987_v20, %s1526_s30 }
 0x1b4   :  { %402 = vrot.lane.b32.xlu0 %v1987_v20, %s1515_s12  ;;  %386 = vrot.lane.b32.xlu1 %v1987_v20, %s1527_s8 }
 0x1b5   :  { %515 = vperm.xlu2 %1350, %v379_v43  }
 0x1bf   :  { %v495_v40 = vpop.permute.xlu2 %494 }
 0x1c7   :  { %v2034_v31 = vpop.permute.xlu2 %414 }
 0x1cf   :  { %v477_v51 = vpop.permute.xlu2 %476 }
 0x1d6   :  { %v2036_v27 = vpop.permute.xlu1 %430  ;;  %v479_v48 = vpop.permute.xlu0 %478 }
 0x1d7   :  { %v486_v38 = vsel %vm249_vm1, %v477_v51, %v479_v48  ;;  %v461_v2 = vpop.permute.xlu2 %460 }
 0x1d8   :  { %v488_v60 = vmul.f32 %v486_v38, %v1831_v21 }
 0x1de   :  { %v463_v33 = vpop.permute.xlu0 %462  ;;  %v493_v59 = vpop.permute.xlu1 %492 }
 0x1df   :  { %v502_v19 = vsel %vm270_vm0, %v493_v59, %v495_v40  ;;  %v470_v58 = vsel %vm228_vm2, %v461_v2, %v463_v33  ;;  %v2049_v57 = vpop.permute.xlu2 %428 }
 0x1e0   :  { %v504_v53 = vmul.f32 %v1799_v1, %v502_v19  ;;  %v472_v25 = vmul.f32 %v470_v58, %v1843_v35 }
 0x1e2   :  { %531 = vmatpush.msrb.mxu0 %v504_v53 }
 0x1e4   :  { %532 = vmatpush.msrb.mxu0 %v488_v60 }
 0x1e6   :  { %v2047_v11 = vpop.permute.xlu0 %398  ;;  %533 = vmatpush.msrb.mxu0 %v472_v25  ;;  %v447_v62 = vpop.permute.xlu1 %446 }
 0x1e7   :  { %v481_v61 = vpop.permute.xlu2 %480 }
 0x1e8   :  { %v485_v53 = vsel %vm249_vm1, %v479_v48, %v481_v61 }
 0x1ee   :  { %v2051_v6 = vpop.permute.xlu0 %382  ;;  %v2053_v45 = vpop.permute.xlu1 %412 }
 0x1ef   :  { %v467_v43 = vpop.permute.xlu2 %466 }
 0x1f6   :  { %v445_v7 = vpop.permute.xlu0 %444  ;;  %v499_v12 = vpop.permute.xlu1 %498 }
 0x1f7   :  { %v454_v10 = vsel %vm207_vm3, %v445_v7, %v447_v62  ;;  %v503_v14 = vsel %vm270_vm0, %v499_v12, %v493_v59 }
 0x1f8   :  { %v456_v23 = vmul.f32 %v454_v10, %v1887_v15  ;;  %v507_v24 = vmul.f32 %v1666_v9, %v503_v14  ;;  %v433_v14 = vpop.permute.xlu2 %432 }
 0x1fa   :  { %534 = vmatpush.msrb.mxu0 %v456_v23  ;;  %600 = vmatpush.msrb.mxu3 %v507_v24 }
 0x1fc   :  { %535 = vmatpush.msrb.mxu0 %v1967_v13  ;;  %v489_v13 = vmul.f32 %v485_v53, %v1834_v26 }
 0x1fe   :  { %v497_v38 = vpop.permute.xlu0 %496  ;;  %v465_v19 = vpop.permute.xlu1 %464 }
 0x1ff   :  { %v500_v58 = vsel %vm270_vm0, %v497_v38, %v499_v12  ;;  %v501_v59 = vsel %vm270_vm0, %v495_v40, %v497_v38  ;;  %v469_v25 = vsel %vm228_vm2, %v463_v33, %v465_v19  ;;  %v471_v40 = vsel %vm228_vm2, %v467_v43, %v461_v2 }
 0x200   :  { %v505_v60 = vmul.f32 %v1804_v5, %v501_v59  ;;  %v506_v9 = vmul.f32 %v1691_v18, %v500_v58  ;;  %v473_v48 = vmul.f32 %v469_v25, %v1846_v36  ;;  %v468_v5 = vsel %vm228_vm2, %v465_v19, %v467_v43  ;;  %v397_v25 = vpop.permute.xlu2 %396 }
 0x201   :  { %v474_v2 = vmul.f32 %v468_v5, %v1715_v29  ;;  %v475_v43 = vmul.f32 %v471_v40, %v1719_v30 }
 0x202   :  { %554 = vmatpush.msrb.mxu1 %v505_v60  ;;  %577 = vmatpush.msrb.mxu2 %v506_v9  ;;  %v438_v60 = vsel %vm186_vm4, %v2049_v57, %v2036_v27  ;;  %v437_v9 = vsel %vm186_vm4, %v2036_v27, %v433_v14  ;;  %v406_v27 = vsel %vm144_vm6, %v397_v25, %v2047_v11 }
 0x203   :  { %v409_v5 = vmul.f32 %v406_v27, %v1932_v52 }
 0x204   :  { %555 = vmatpush.msrb.mxu1 %v489_v13  ;;  %v442_v13 = vmul.f32 %v437_v9, %v1760_v47 }
 0x206   :  { %v483_v10 = vpop.permute.xlu0 %482  ;;  %556 = vmatpush.msrb.mxu1 %v473_v48  ;;  %v451_v12 = vpop.permute.xlu1 %450  ;;  %v378_v48 = vld [vmem:[%s2812_s6 + $0x8] sm:$0xff] }
 0x207   :  { %v484_v18 = vsel %vm249_vm1, %v481_v61, %v483_v10  ;;  %v487_v33 = vsel %vm249_vm1, %v483_v10, %v477_v51  ;;  %v455_v38 = vsel %vm207_vm3, %v451_v12, %v445_v7  ;;  %510 = vperm.xlu0 %1351, %v378_v48  }
 0x208   :  { %v490_v23 = vmul.f32 %v484_v18, %v1701_v22  ;;  %v491_v24 = vmul.f32 %v487_v33, %v1685_v17  ;;  %v459_v61 = vmul.f32 %v455_v38, %v1740_v39  ;;  %v376_v38 = vld [vmem:[#allocation7] sm:$0xff] }
 0x20a   :  { %578 = vmatpush.msrb.mxu2 %v490_v23  ;;  %601 = vmatpush.msrb.mxu3 %v491_v24  ;;  %v419_v24 = vpop.permute.xlu2 %418 }
 0x20c   :  { %579 = vmatpush.msrb.mxu2 %v474_v2  ;;  %602 = vmatpush.msrb.mxu3 %v475_v43  ;;  %v423_v43 = vsel %vm165_vm5, %v419_v24, %v2053_v45 }
 0x20e   :  { %v449_v19 = vpop.permute.xlu0 %448  ;;  %603 = vmatpush.msrb.mxu3 %v459_v61  ;;  %v401_v51 = vpop.permute.xlu1 %400 }
 0x20f   :  { %v452_v53 = vsel %vm207_vm3, %v449_v19, %v451_v12  ;;  %v453_v58 = vsel %vm207_vm3, %v447_v62, %v449_v19  ;;  %v441_v62 = vmul.f32 %v438_v60, %v1904_v41 }
 0x210   :  { %604 = vmatpush.msrb.mxu3 %v1987_v20  ;;  %v457_v7 = vmul.f32 %v453_v58, %v1890_v16  ;;  %v458_v59 = vmul.f32 %v452_v53, %v1734_v37  ;;  %v422_v20 = vsel %vm165_vm5, %v2053_v45, %v2034_v31 }
 0x212   :  { %557 = vmatpush.msrb.mxu1 %v457_v7  ;;  %580 = vmatpush.msrb.mxu2 %v458_v59 }
 0x214   :  { %558 = vmatpush.msrb.mxu1 %v1959_v63  ;;  %581 = vmatpush.msrb.mxu2 %v1995_v32  ;;  %v425_v63 = vmul.f32 %v422_v20, %v1916_v44  ;;  %v405_v32 = vsel %vm144_vm6, %v2047_v11, %v401_v51 }
 0x215   :  { %v410_v23 = vmul.f32 %v405_v32, %v1794_v0 }
 0x216   :  { %v417_v10 = vpop.permute.xlu0 %416  ;;  %559 = vmatpush.msrb.mxu1 %v441_v62  ;;  %582 = vmatpush.msrb.mxu2 %v442_v13  ;;  %v385_v12 = vpop.permute.xlu1 %384 }
 0x217   :  { %v421_v40 = vsel %vm165_vm5, %v2034_v31, %v417_v10  ;;  %v389_v33 = vsel %vm123_vm7, %v2051_v6, %v385_v12  ;;  %v420_v58 = vsel %vm165_vm5, %v417_v10, %v419_v24  ;;  %v516_v24 = vpop.permute.xlu2 %515 }
 0x218   :  { %560 = vmatpush.msrb.mxu1 %v425_v63  ;;  %v426_v18 = vmul.f32 %v421_v40, %v1778_v56  ;;  %v394_v11 = vmul.f32 %v389_v33, %v1872_v49 }
 0x21a   :  { %561 = vmatpush.msrb.mxu1 %v409_v5  ;;  %583 = vmatpush.msrb.mxu2 %v426_v18 }
 0x21c   :  { %584 = vmatpush.msrb.mxu2 %v410_v23 }
 0x21e   :  { %v435_v31 = vpop.permute.xlu0 %434  ;;  %585 = vmatpush.msrb.mxu2 %v394_v11  ;;  %v381_v2 = vpop.permute.xlu1 %380 }
 0x21f   :  { %v436_v61 = vsel %vm186_vm4, %v433_v14, %v435_v31  ;;  %v439_v19 = vsel %vm186_vm4, %v435_v31, %v2049_v57  ;;  %v390_v53 = vsel %vm123_vm7, %v381_v2, %v2051_v6  ;;  %1308 = vmatmul.msk.f32.vlgmr.msrb.gmra.mxu2 %vm288_vm8, %v376_v38  ;;  %v424_v14 = vmul.f32 %v423_v43, %v1913_v42  ;;  %v377_v6 = vld [vmem:[#allocation7 + $0x8] sm:$0xff] }
 0x220   :  { %v440_v7 = vmul.f32 %v439_v19, %v1901_v34  ;;  %v393_v45 = vmul.f32 %v390_v53, %v1940_v4  ;;  %v443_v59 = vmul.f32 %v436_v61, %v1756_v46  ;;  %v427_v57 = vmul.f32 %v420_v58, %v1774_v55 }
 0x222   :  { %536 = vmatpush.msrb.mxu0 %v440_v7  ;;  %562 = vmatpush.msrb.mxu1 %v393_v45 }
 0x223   :  { %605 = vmatpush.msrb.mxu3 %v443_v59  ;;  %1306 = vmatmul.msk.f32.vlgmr.msrb.gmra.mxu1 %vm288_vm8, %v376_v38 }
 0x224   :  { %537 = vmatpush.msrb.mxu0 %v424_v14 }
 0x225   :  { %606 = vmatpush.msrb.mxu3 %v427_v57 }
 0x226   :  { %v403_v60 = vpop.permute.xlu0 %402  ;;  %v387_v9 = vpop.permute.xlu1 %386 }
 0x227   :  { %v404_v20 = vsel %vm144_vm6, %v401_v51, %v403_v60  ;;  %v407_v62 = vsel %vm144_vm6, %v403_v60, %v397_v25  ;;  %v388_v13 = vsel %vm123_vm7, %v385_v12, %v387_v9  ;;  %v391_v27 = vsel %vm123_vm7, %v387_v9, %v381_v2  ;;  %1309 = vmatmul.msk.f32.gmra.mxu2 %vm288_vm8, %v377_v6 }
 0x228   :  { %v408_v48 = vmul.f32 %v407_v62, %v1929_v50  ;;  %v411_v10 = vmul.f32 %v404_v20, %v1837_v28  ;;  %v392_v63 = vmul.f32 %v391_v27, %v1937_v3  ;;  %v395_v51 = vmul.f32 %v388_v13, %v1875_v54  ;;  %v633_v28 = vld [vmem:[%s2812_s6 + $0x20] sm:$0xff] }
 0x22a   :  { %538 = vmatpush.msrb.mxu0 %v408_v48  ;;  %607 = vmatpush.msrb.mxu3 %v411_v10 }
 0x22b   :  { %1307 = vmatmul.msk.f32.gmra.mxu1 %vm288_vm8, %v377_v6 }
 0x22c   :  { %539 = vmatpush.msrb.mxu0 %v392_v63  ;;  %608 = vmatpush.msrb.mxu3 %v395_v51 }
 0x22d   :  { %1304 = vmatmul.msk.f32.vlgmr.msrb.gmra.mxu0 %vm288_vm8, %v376_v38  ;;  %1310 = vmatmul.msk.f32.vlgmr.msrb.gmra.mxu3 %vm288_vm8, %v376_v38 }
 0x235   :  { %1305 = vmatmul.msk.f32.gmra.mxu0 %vm288_vm8, %v377_v6  ;;  %1311 = vmatmul.msk.f32.gmra.mxu3 %vm288_vm8, %v377_v6 }
 0x279   :  { %v511_v25 = vpop.permute.xlu0 %510 }
 0x2a0   :  { %v564_v5 = vpop.f32.mrf.mxu1 }
 0x2a1   :  { %v565_v18 = vadd.f32 %v564_v5, %v511_v25 }
 0x2a2   :  { %v587_v31 = vpop.f32.mrf.mxu2 }
 0x2a3   :  { %v2183_v33 = vmax.f32 %v565_v18, 0.0  ;;  %v588_v2 = vadd.f32 %v587_v31, %v511_v25 }
 0x2a5   :  { %v2211_v43 = vmax.f32 %v588_v2, 0.0 }
 0x2a7   :  { %2855 = vst [vmem:[#allocation27_spill] sm:$0xff] %v2211_v43 }
 0x2a8   :  { %v567_v58 = vpop.f32.mrf.mxu1 }
 0x2a9   :  { %v568_v7 = vadd.f32 %v567_v58, %v516_v24 }
 0x2aa   :  { %v541_v12 = vpop.f32.mrf.mxu0  ;;  %v590_v59 = vpop.f32.mrf.mxu2 }
 0x2ab   :  { %v542_v32 = vadd.f32 %v541_v12, %v511_v25  ;;  %v2233_v45 = vmax.f32 %v568_v7, 0.0  ;;  %v591_v14 = vadd.f32 %v590_v59, %v516_v24  ;;  %v635_v7 = vld [vmem:[%s2812_s6 + $0x30] sm:$0xff] }
 0x2ad   :  { %v2169_v40 = vmax.f32 %v542_v32, 0.0  ;;  %v2247_v57 = vmax.f32 %v591_v14, 0.0 }
 0x2af   :  { %700 = vrot.lane.b32.xlu0 %v2169_v40, %s1526_s30  ;;  %764 = vrot.lane.b32.xlu1 %v2169_v40, %s1524_s28  ;;  %2857 = vst [vmem:[#allocation29_spill] sm:$0xff] %v2247_v57 }
 0x2b0   :  { %828 = vrot.lane.b32.xlu2 %v2169_v40, %s1522_s5  ;;  %v610_v61 = vpop.f32.mrf.mxu3 }
 0x2b1   :  { %v611_v19 = vadd.f32 %v610_v61, %v511_v25 }
 0x2b2   :  { %v544_v23 = vpop.f32.mrf.mxu0 }
 0x2b3   :  { %v545_v11 = vadd.f32 %v544_v23, %v516_v24  ;;  %v2219_v53 = vmax.f32 %v611_v19, 0.0 }
 0x2b5   :  { %v2191_v38 = vmax.f32 %v545_v11, 0.0  ;;  %2856 = vst [vmem:[#allocation28_spill] sm:$0xff] %v2219_v53 }
 0x2b7   :  { %668 = vrot.lane.b32.xlu0 %v2169_v40, %s1515_s12  ;;  %732 = vrot.lane.b32.xlu1 %v2169_v40, %s1525_s29 }
 0x2b8   :  { %796 = vrot.lane.b32.xlu2 %v2169_v40, %s1523_s27  ;;  %v613_v60 = vpop.f32.mrf.mxu3 }
 0x2b9   :  { %v614_v9 = vadd.f32 %v613_v60, %v516_v24 }
 0x2bb   :  { %v2265_v62 = vmax.f32 %v614_v9, 0.0  ;;  %v632_v9 = vld [vmem:[%s2812_s6 + $0x18] sm:$0xff] }
 0x2bd   :  { %2858 = vst [vmem:[#allocation30_spill] sm:$0xff] %v2265_v62 }
 0x2bf   :  { %636 = vrot.lane.b32.xlu0 %v2169_v40, %s1527_s8  ;;  %832 = vrot.lane.b32.xlu1 %v2183_v33, %s1522_s5 }
 0x2c0   :  { %736 = vrot.lane.b32.xlu2 %v2183_v33, %s1525_s29 }
 0x2c7   :  { %800 = vrot.lane.b32.xlu0 %v2183_v33, %s1523_s27  ;;  %704 = vrot.lane.b32.xlu1 %v2183_v33, %s1526_s30 }
 0x2c8   :  { %830 = vrot.lane.b32.xlu2 %v2191_v38, %s1522_s5 }
 0x2cf   :  { %768 = vrot.lane.b32.xlu0 %v2183_v33, %s1524_s28  ;;  %672 = vrot.lane.b32.xlu1 %v2183_v33, %s1515_s12 }
 0x2d0   :  { %798 = vrot.lane.b32.xlu2 %v2191_v38, %s1523_s27 }
 0x2d7   :  { %864 = vrot.lane.b32.xlu0 %v2183_v33, %s1521_s3  ;;  %640 = vrot.lane.b32.xlu1 %v2183_v33, %s1527_s8 }
 0x2d8   :  { %734 = vrot.lane.b32.xlu2 %v2191_v38, %s1525_s29 }
 0x2df   :  { %766 = vrot.lane.b32.xlu0 %v2191_v38, %s1524_s28  ;;  %804 = vrot.lane.b32.xlu1 %v2211_v43, %s1523_s27 }
 0x2e0   :  { %836 = vrot.lane.b32.xlu2 %v2211_v43, %s1522_s5 }
 0x2e7   :  { %702 = vrot.lane.b32.xlu0 %v2191_v38, %s1526_s30  ;;  %772 = vrot.lane.b32.xlu1 %v2211_v43, %s1524_s28 }
 0x2e8   :  { %744 = vrot.lane.b32.xlu2 %v2219_v53, %s1525_s29 }
 0x2ef   :  { %670 = vrot.lane.b32.xlu0 %v2191_v38, %s1515_s12  ;;  %648 = vrot.lane.b32.xlu1 %v2219_v53, %s1527_s8 }
 0x2f0   :  { %712 = vrot.lane.b32.xlu2 %v2219_v53, %s1526_s30 }
 0x2f7   :  { %638 = vrot.lane.b32.xlu0 %v2191_v38, %s1527_s8  ;;  %834 = vrot.lane.b32.xlu1 %v2233_v45, %s1522_s5 }
 0x2f8   :  { %680 = vrot.lane.b32.xlu2 %v2219_v53, %s1515_s12 }
 0x2ff   :  { %802 = vrot.lane.b32.xlu0 %v2233_v45, %s1523_s27  ;;  %706 = vrot.lane.b32.xlu1 %v2233_v45, %s1526_s30 }
 0x300   :  { %840 = vrot.lane.b32.xlu2 %v2219_v53, %s1522_s5 }
 0x307   :  { %770 = vrot.lane.b32.xlu0 %v2233_v45, %s1524_s28  ;;  %674 = vrot.lane.b32.xlu1 %v2233_v45, %s1515_s12 }
 0x308   :  { %838 = vrot.lane.b32.xlu2 %v2247_v57, %s1522_s5 }
 0x30a   :  { %v2255_v6 = vpop.permute.xlu2 %828 }
 0x30f   :  { %738 = vrot.lane.b32.xlu0 %v2233_v45, %s1525_s29  ;;  %642 = vrot.lane.b32.xlu1 %v2233_v45, %s1527_s8 }
 0x310   :  { %860 = vrot.lane.b32.xlu2 %v2169_v40, %s1521_s3 }
 0x312   :  { %v2263_v20 = vpop.permute.xlu2 %796 }
 0x317   :  { %866 = vrot.lane.b32.xlu0 %v2233_v45, %s1521_s3  ;;  %806 = vrot.lane.b32.xlu1 %v2247_v57, %s1523_s27 }
 0x318   :  { %746 = vrot.lane.b32.xlu2 %v2265_v62, %s1525_s29 }
 0x31a   :  { %v2273_v13 = vpop.permute.xlu2 %736 }
 0x31f   :  { %862 = vrot.lane.b32.xlu0 %v2191_v38, %s1521_s3  ;;  %774 = vrot.lane.b32.xlu1 %v2247_v57, %s1524_s28 }
 0x320   :  { %714 = vrot.lane.b32.xlu2 %v2265_v62, %s1526_s30 }
 0x321   :  { %v2281_v27 = vpop.permute.xlu0 %700  ;;  %v2283_v48 = vpop.permute.xlu1 %764 }
 0x322   :  { %v2285_v10 = vpop.permute.xlu2 %830 }
 0x327   :  { %650 = vrot.lane.b32.xlu0 %v2265_v62, %s1527_s8  ;;  %868 = vrot.lane.b32.xlu1 %v2211_v43, %s1521_s3 }
 0x328   :  { %682 = vrot.lane.b32.xlu2 %v2265_v62, %s1515_s12 }
 0x329   :  { %v2293_v63 = vpop.permute.xlu0 %668  ;;  %v2295_v51 = vpop.permute.xlu1 %732 }
 0x32a   :  { %v2297_v25 = vpop.permute.xlu2 %798 }
 0x32f   :  { %778 = vrot.lane.b32.xlu0 %v2265_v62, %s1524_s28  ;;  %808 = vrot.lane.b32.xlu1 %v2219_v53, %s1523_s27 }
 0x330   :  { %842 = vrot.lane.b32.xlu2 %v2265_v62, %s1522_s5 }
 0x331   :  { %v2305_v12 = vpop.permute.xlu0 %636  ;;  %v833_v32 = vpop.permute.xlu1 %832 }
 0x332   :  { %v2307_v5 = vpop.permute.xlu2 %734  ;;  %v848_v46 = vsel %vm249_vm1, %v2255_v6, %v833_v32 }
 0x333   :  { %v852_v39 = vmul.f32 %v848_v46, %v1831_v21 }
 0x337   :  { %740 = vrot.lane.b32.xlu0 %v2211_v43, %s1525_s29  ;;  %870 = vrot.lane.b32.xlu1 %v2247_v57, %s1521_s3 }
 0x338   :  { %810 = vrot.lane.b32.xlu2 %v2265_v62, %s1523_s27 }
 0x339   :  { %v2315_v18 = vpop.permute.xlu0 %800  ;;  %v2317_v23 = vpop.permute.xlu1 %704 }
 0x33a   :  { %v2319_v24 = vpop.permute.xlu2 %836 }
 0x33f   :  { %678 = vrot.lane.b32.xlu0 %v2247_v57, %s1515_s12  ;;  %776 = vrot.lane.b32.xlu1 %v2219_v53, %s1524_s28 }
 0x340   :  { %708 = vrot.lane.b32.xlu2 %v2211_v43, %s1526_s30 }
 0x341   :  { %v2327_v11 = vpop.permute.xlu0 %768  ;;  %v2329_v31 = vpop.permute.xlu1 %672 }
 0x342   :  { %v2331_v2 = vpop.permute.xlu2 %744 }
 0x343   :  { %2859 = vst [vmem:[#allocation31_spill] sm:$0xff] %v2331_v2 }
 0x347   :  { %872 = vrot.lane.b32.xlu0 %v2219_v53, %s1521_s3  ;;  %710 = vrot.lane.b32.xlu1 %v2247_v57, %s1526_s30 }
 0x348   :  { %742 = vrot.lane.b32.xlu2 %v2247_v57, %s1525_s29 }
 0x349   :  { %v2339_v61 = vpop.permute.xlu0 %864  ;;  %v2341_v19 = vpop.permute.xlu1 %640 }
 0x34a   :  { %2860 = vst [vmem:[#allocation32_spill] sm:$0xff] %v2341_v19  ;;  %v2343_v58 = vpop.permute.xlu2 %712 }
 0x34f   :  { %909 = vperm.xlu0 %1351, %v635_v7   ;;  %874 = vrot.lane.b32.xlu1 %v2265_v62, %s1521_s3 }
 0x350   :  { %676 = vrot.lane.b32.xlu2 %v2211_v43, %s1515_s12 }
 0x351   :  { %v2352_v59 = vpop.permute.xlu0 %766  ;;  %v2354_v14 = vpop.permute.xlu1 %804 }
 0x352   :  { %v2356_v60 = vpop.permute.xlu2 %680 }
 0x353   :  { %2861 = vst [vmem:[#allocation33_spill] sm:$0xff] %v2356_v60 }
 0x357   :  { %894 = vperm.xlu0 %1351, %v632_v9   ;;  %646 = vrot.lane.b32.xlu1 %v2247_v57, %s1527_s8 }
 0x358   :  { %644 = vrot.lane.b32.xlu2 %v2211_v43, %s1527_s8  ;;  %v846_v43 = vsel %vm249_vm1, %v833_v32, %v2319_v24 }
 0x359   :  { %v2365_v7 = vpop.permute.xlu0 %702  ;;  %v2367_v54 = vpop.permute.xlu1 %772  ;;  %v853_v19 = vmul.f32 %v846_v43, %v1834_v26 }
 0x35a   :  { %v2369_v49 = vpop.permute.xlu2 %840 }
 0x360   :  { %899 = vperm.xlu2 %1350, %v633_v28  }
 0x361   :  { %v2374_v0 = vpop.permute.xlu0 %670  ;;  %v2376_v9 = vpop.permute.xlu1 %648 }
 0x362   :  { %v2378_v55 = vpop.permute.xlu2 %838 }
 0x369   :  { %v2380_v56 = vpop.permute.xlu0 %638  ;;  %v835_v53 = vpop.permute.xlu1 %834 }
 0x36a   :  { %v847_v28 = vsel %vm249_vm1, %v835_v53, %v2378_v55  ;;  %v849_v47 = vsel %vm249_vm1, %v2285_v10, %v835_v53  ;;  %v2394_v62 = vpop.permute.xlu2 %860  ;;  %v816_v53 = vsel %vm228_vm2, %v2263_v20, %v2315_v18 }
 0x36b   :  { %v856_v57 = vmul.f32 %v849_v47, %v1831_v21  ;;  %v857_v4 = vmul.f32 %v847_v28, %v1834_v26  ;;  %v820_v21 = vmul.f32 %v816_v53, %v1843_v35 }
 0x36d   :  { %925 = vmatpush.msra.mxu0 %v856_v57  ;;  %983 = vmatpush.msra.mxu2 %v857_v4  ;;  %v784_v4 = vsel %vm207_vm3, %v2283_v48, %v2327_v11 }
 0x36f   :  { %926 = vmatpush.msra.mxu0 %v852_v39  ;;  %984 = vmatpush.msra.mxu2 %v853_v19 }
 0x371   :  { %v803_v32 = vpop.permute.xlu0 %802  ;;  %v2400_v37 = vpop.permute.xlu1 %706 }
 0x372   :  { %v817_v47 = vsel %vm228_vm2, %v2297_v25, %v803_v32  ;;  %v2409_v28 = vpop.permute.xlu2 %746 }
 0x373   :  { %v824_v46 = vmul.f32 %v817_v47, %v1843_v35  ;;  %v788_v35 = vmul.f32 %v784_v4, %v1887_v15  ;;  %v755_v53 = vsel %vm186_vm4, %v2409_v28, %v2307_v5 }
 0x375   :  { %927 = vmatpush.msra.mxu0 %v824_v46 }
 0x377   :  { %928 = vmatpush.msra.mxu0 %v820_v21  ;;  %v754_v21 = vsel %vm186_vm4, %v2331_v2, %v2295_v51 }
 0x379   :  { %v771_v39 = vpop.permute.xlu0 %770  ;;  %v2413_v26 = vpop.permute.xlu1 %674 }
 0x37a   :  { %v785_v43 = vsel %vm207_vm3, %v2352_v59, %v771_v39  ;;  %v2422_v57 = vpop.permute.xlu2 %714 }
 0x37b   :  { %2862 = vst [vmem:[#allocation34_spill] sm:$0xff] %v2422_v57  ;;  %v792_v19 = vmul.f32 %v785_v43, %v1887_v15  ;;  %v760_v15 = vmul.f32 %v755_v53, %v1901_v34  ;;  %v723_v4 = vsel %vm165_vm5, %v2422_v57, %v2365_v7 }
 0x37d   :  { %929 = vmatpush.msra.mxu0 %v792_v19  ;;  %v722_v19 = vsel %vm165_vm5, %v2343_v58, %v2281_v27 }
 0x37e   :  { %v724_v53 = vmul.f32 %v722_v19, %v1913_v42 }
 0x37f   :  { %930 = vmatpush.msra.mxu0 %v788_v35  ;;  %v728_v35 = vmul.f32 %v723_v4, %v1913_v42 }
 0x381   :  { %v2430_v47 = vpop.permute.xlu0 %738  ;;  %931 = vmatpush.msra.mxu0 %v2191_v38  ;;  %v2433_v46 = vpop.permute.xlu1 %642  ;;  %v756_v38 = vmul.f32 %v754_v21, %v1901_v34  ;;  %v814_v34 = vsel %vm228_vm2, %v2315_v18, %v2354_v14  ;;  %v690_v21 = vsel %vm144_vm6, %v2356_v60, %v2293_v63 }
 0x382   :  { %v2439_v43 = vpop.permute.xlu2 %682  ;;  %v821_v19 = vmul.f32 %v814_v34, %v1846_v36 }
 0x383   :  { %932 = vmatpush.msra.mxu0 %v2169_v40  ;;  %v691_v40 = vsel %vm144_vm6, %v2439_v43, %v2374_v0 }
 0x384   :  { %v696_v42 = vmul.f32 %v691_v40, %v1929_v50  ;;  %v880_v40 = vsel %vm270_vm0, %v2394_v62, %v2339_v61 }
 0x385   :  { %933 = vmatpush.msra.mxu0 %v760_v15 }
 0x387   :  { %934 = vmatpush.msra.mxu0 %v756_v38 }
 0x389   :  { %v2458_v2 = vpop.permute.xlu0 %866  ;;  %v807_v57 = vpop.permute.xlu1 %806  ;;  %935 = vmatpush.msra.mxu0 %v728_v35  ;;  %v692_v35 = vmul.f32 %v690_v21, %v1929_v50 }
 0x38a   :  { %v815_v15 = vsel %vm228_vm2, %v803_v32, %v807_v57  ;;  %v843_v4 = vpop.permute.xlu2 %842  ;;  %v782_v32 = vsel %vm207_vm3, %v2327_v11, %v2367_v54 }
 0x38b   :  { %v825_v38 = vmul.f32 %v815_v15, %v1846_v36  ;;  %936 = vmatpush.msra.mxu0 %v724_v53  ;;  %v845_v53 = vsel %vm249_vm1, %v2378_v55, %v843_v4  ;;  %v789_v15 = vmul.f32 %v782_v32, %v1890_v16 }
 0x38d   :  { %937 = vmatpush.msra.mxu0 %v696_v42  ;;  %985 = vmatpush.msra.mxu2 %v825_v38  ;;  %v844_v42 = vsel %vm249_vm1, %v2319_v24, %v2369_v49  ;;  %v884_v38 = vmul.f32 %v1799_v1, %v880_v40  ;;  %v753_v24 = vsel %vm186_vm4, %v2307_v5, %v2430_v47 }
 0x38e   :  { %v658_v5 = vsel %vm123_vm7, %v2376_v9, %v2305_v12  ;;  %v761_v32 = vmul.f32 %v753_v24, %v1904_v41 }
 0x38f   :  { %938 = vmatpush.msra.mxu0 %v692_v35  ;;  %986 = vmatpush.msra.mxu2 %v821_v19  ;;  %v2502_v19 = vld [vmem:[#allocation8 + $0x8] sm:$0xff] }
 0x391   :  { %v2474_v18 = vpop.permute.xlu0 %862  ;;  %v775_v60 = vpop.permute.xlu1 %774 }
 0x392   :  { %v881_v36 = vsel %vm270_vm0, %v2474_v18, %v2458_v2  ;;  %v783_v50 = vsel %vm207_vm3, %v771_v39, %v775_v60  ;;  %v811_v21 = vpop.permute.xlu2 %810  ;;  %v858_v39 = vmul.f32 %v845_v53, %v1701_v22  ;;  %v660_v53 = vmul.f32 %v658_v5, %v1937_v3  ;;  %v2866_v5 = vld [vmem:[#allocation26_spill] sm:$0xff] }
 0x393   :  { %v888_v34 = vmul.f32 %v1799_v1, %v881_v36  ;;  %v793_v11 = vmul.f32 %v783_v50, %v1890_v16  ;;  %v813_v55 = vsel %vm228_vm2, %v807_v57, %v811_v21  ;;  %v854_v16 = vmul.f32 %v844_v42, %v1701_v22 }
 0x394   :  { %v752_v22 = vsel %vm186_vm4, %v2295_v51, %v2273_v13  ;;  %v826_v57 = vmul.f32 %v813_v55, %v1715_v29  ;;  %v721_v51 = vsel %vm165_vm5, %v2365_v7, %v2400_v37  ;;  %v851_v36 = vsel %vm249_vm1, %v843_v4, %v2285_v10 }
 0x395   :  { %968 = vmatpush.msra.mxu1 %v888_v34  ;;  %987 = vmatpush.msra.mxu2 %v793_v11  ;;  %v757_v50 = vmul.f32 %v752_v22, %v1904_v41  ;;  %v2543_v34 = vld [vmem:[#allocation8] sm:$0xff]  ;;  %v720_v7 = vsel %vm165_vm5, %v2281_v27, %v2317_v23  ;;  %v729_v10 = vmul.f32 %v721_v51, %v1916_v44  ;;  %v2604_v22 = vld [vmem:[#allocation8 + $0x28] sm:$0xff]  ;;  %v1357_v51 = vld [vmem:[%s2807_s1 + $0x28] ss:$0 sm:$0xff] }
 0x396   :  { %v859_v41 = vmul.f32 %v851_v36, %v1685_v17  ;;  %v819_v4 = vsel %vm228_vm2, %v811_v21, %v2297_v25 }
 0x397   :  { %969 = vmatpush.msra.mxu1 %v884_v38  ;;  %988 = vmatpush.msra.mxu2 %v789_v15  ;;  %v725_v15 = vmul.f32 %v720_v7, %v1916_v44  ;;  %v827_v44 = vmul.f32 %v819_v4, %v1719_v30  ;;  %v657_v38 = vsel %vm123_vm7, %v2380_v56, %v2433_v46 }
 0x398   :  { %1312 = vmatmul.msk.f32.vlgmr.msra.gmra.mxu1 %vm912_vm9, %v2502_v19 }
 0x399   :  { %1041 = vmatpush.msrb.mxu1 %v858_v39  ;;  %v2511_v1 = vpop.permute.xlu0 %650  ;;  %v2513_v35 = vpop.permute.xlu1 %868  ;;  %989 = vmatpush.msra.mxu2 %v2233_v45 }
 0x39a   :  { %v659_v45 = vsel %vm123_vm7, %v2511_v1, %v2380_v56  ;;  %v2865_v56 = vld [vmem:[#allocation17_spill] sm:$0xff] }
 0x39b   :  { %1042 = vmatpush.msrb.mxu1 %v854_v16  ;;  %v664_v40 = vmul.f32 %v659_v45, %v1937_v3  ;;  %990 = vmatpush.msra.mxu2 %v2183_v33  ;;  %v850_v33 = vsel %vm249_vm1, %v2369_v49, %v2255_v6  ;;  %v2555_v3 = vld [vmem:[#allocation8 + $0x18] sm:$0xff]  ;;  %v689_v6 = vsel %vm144_vm6, %v2374_v0, %v2413_v26  ;;  %v709_v45 = vpop.permute.xlu2 %708 }
 0x39c   :  { %v855_v49 = vmul.f32 %v850_v33, %v1685_v17  ;;  %v688_v0 = vsel %vm144_vm6, %v2293_v63, %v2329_v31  ;;  %v2863_v63 = vld [vmem:[#allocation16_spill] sm:$0xff] }
 0x39d   :  { %1043 = vmatpush.msrb.mxu1 %v826_v57  ;;  %939 = vmatpush.msra.mxu0 %v664_v40  ;;  %v693_v55 = vmul.f32 %v688_v0, %v1932_v52  ;;  %v665_v57 = vmul.f32 %v657_v38, %v2866_v5  ;;  %v2627_v33 = vld [vmem:[#allocation8 + $0x38] sm:$0xff]  ;;  %v2874_v38 = vld [vmem:[#allocation34_spill] sm:$0xff] }
 0x39e   :  { %991 = vmatpush.msra.mxu2 %v761_v32 }
 0x39f   :  { %940 = vmatpush.msra.mxu0 %v660_v53 }
 0x3a0   :  { %992 = vmatpush.msra.mxu2 %v757_v50  ;;  %941 = vmatmul.f32.vlgmr.msra.gmra.mxu0 %v2543_v34 }
 0x3a1   :  { %1099 = vmatpush.msrb.mxu0 %v859_v41  ;;  %v779_v27 = vpop.permute.xlu0 %778  ;;  %v809_v11 = vpop.permute.xlu1 %808  ;;  %1313 = vmatmul.msk.f32.gmra.mxu1 %vm912_vm9, %v2555_v3 }
 0x3a2   :  { %993 = vmatpush.msra.mxu2 %v729_v10  ;;  %v781_v42 = vsel %vm207_vm3, %v775_v60, %v779_v27  ;;  %v812_v25 = vsel %vm228_vm2, %v2354_v14, %v809_v11  ;;  %v818_v17 = vsel %vm228_vm2, %v809_v11, %v2263_v20  ;;  %v697_v14 = vmul.f32 %v689_v6, %v1932_v52  ;;  %v2867_v11 = vld [vmem:[#allocation29_spill] sm:$0xff] }
 0x3a3   :  { %v822_v60 = vmul.f32 %v812_v25, %v1715_v29  ;;  %v823_v21 = vmul.f32 %v818_v17, %v1719_v30  ;;  %1100 = vmatpush.msrb.mxu0 %v855_v49  ;;  %v787_v20 = vsel %vm207_vm3, %v779_v27, %v2352_v59  ;;  %v794_v39 = vmul.f32 %v781_v42, %v2863_v63  ;;  %v2593_v29 = vld [vmem:[#allocation8 + $0x10] sm:$0xff]  ;;  %v743_v41 = vpop.permute.xlu2 %742  ;;  %v2868_v42 = vld [vmem:[#allocation30_spill] sm:$0xff] }
 0x3a4   :  { %994 = vmatpush.msra.mxu2 %v725_v15  ;;  %v634_v30 = vld [vmem:[%s2812_s6 + $0x28] sm:$0xff]  ;;  %v795_v24 = vmul.f32 %v787_v20, %v2865_v56  ;;  %v751_v6 = vsel %vm186_vm4, %v2430_v47, %v743_v41 }
 0x3a5   :  { %1101 = vmatpush.msrb.mxu0 %v827_v44  ;;  %1044 = vmatpush.msrb.mxu1 %v822_v60  ;;  %v2864_v59 = vld [vmem:[#allocation32_spill] sm:$0xff]  ;;  %v2869_v47 = vld [vmem:[#allocation19_spill] sm:$0xff]  ;;  %v2872_v60 = vld [vmem:[#allocation18_spill] sm:$0xff] }
 0x3a6   :  { %995 = vmatpush.msra.mxu2 %v697_v14  ;;  %904 = vperm.xlu1 %1352, %v634_v30   ;;  %v656_v16 = vsel %vm123_vm7, %v2305_v12, %v2864_v59  ;;  %v878_v12 = vsel %vm270_vm0, %v2339_v61, %v2513_v35  ;;  %v2625_v61 = vld [vmem:[#allocation8 + $0x20] sm:$0xff]  ;;  %v2646_v27 = vld [vmem:[#allocation8 + $0x30] sm:$0xff]  ;;  %v762_v25 = vmul.f32 %v751_v6, %v2869_v47 }
 0x3a7   :  { %1102 = vmatpush.msrb.mxu0 %v823_v21  ;;  %1045 = vmatpush.msrb.mxu1 %v794_v39  ;;  %v661_v32 = vmul.f32 %v656_v16, %v2866_v5  ;;  %v885_v53 = vmul.f32 %v1357_v51, %v878_v12  ;;  %v2870_v17 = vld [vmem:[#allocation31_spill] sm:$0xff]  ;;  %v2873_v14 = vld [vmem:[#allocation28_spill] sm:$0xff]  ;;  %v718_v39 = vsel %vm165_vm5, %v2317_v23, %v709_v45  ;;  %v2875_v16 = vld [vmem:[#allocation21_spill] sm:$0xff] }
 0x3a8   :  { %996 = vmatpush.msra.mxu2 %v693_v55  ;;  %944 = vmatmul.f32.gmra.mxu0 %v2593_v29  ;;  %v2871_v44 = vld [vmem:[#allocation27_spill] sm:$0xff]  ;;  %v2876_v5 = vld [vmem:[#allocation20_spill] sm:$0xff]  ;;  %v726_v23 = vmul.f32 %v718_v39, %v2875_v16 }
 0x3a9   :  { %1103 = vmatpush.msrb.mxu0 %v795_v24  ;;  %v2608_v52 = vpop.permute.xlu1 %870  ;;  %1314 = vmatmul.msk.f32.gmra.mxu1 %vm912_vm9, %v2604_v22  ;;  %v741_v50 = vpop.permute.xlu0 %740 }
 0x3aa   :  { %v879_v40 = vsel %vm270_vm0, %v2458_v2, %v2608_v52  ;;  %997 = vmatpush.msra.mxu2 %v665_v57  ;;  %v750_v15 = vsel %vm186_vm4, %v2273_v13, %v741_v50  ;;  %v748_v0 = vsel %vm186_vm4, %v741_v50, %v2870_v17  ;;  %v2880_v17 = vld [vmem:[#allocation24_spill] sm:$0xff] }
 0x3ab   :  { %v889_v36 = vmul.f32 %v1357_v51, %v879_v40  ;;  %v758_v20 = vmul.f32 %v750_v15, %v2869_v47  ;;  %v759_v30 = vmul.f32 %v748_v0, %v2872_v60  ;;  %v677_v55 = vpop.permute.xlu2 %676  ;;  %v2878_v51 = vld [vmem:[#allocation22_spill] sm:$0xff] }
 0x3ac   :  { %998 = vmatpush.msra.mxu2 %v661_v32 }
 0x3ad   :  { %999 = vmatmul.f32.vlgmr.msra.gmra.mxu2 %v2543_v34  ;;  %1026 = vmatpush.msra.mxu3 %v889_v36 }
 0x3af   :  { %1027 = vmatpush.msra.mxu3 %v885_v53 }
 0x3b0   :  { %947 = vmatmul.f32.gmra.mxu0 %v2625_v61  ;;  %1316 = vmatmul.msk.f32.vlgmr.msra.gmra.mxu3 %vm912_vm9, %v2502_v19 }
 0x3b1   :  { %v777_v2 = vpop.permute.xlu1 %776  ;;  %1315 = vmatmul.msk.f32.gmra.mxu1 %vm912_vm9, %v2627_v33 }
 0x3b2   :  { %v780_v7 = vsel %vm207_vm3, %v2367_v54, %v777_v2  ;;  %v786_v10 = vsel %vm207_vm3, %v777_v2, %v2283_v48  ;;  %v679_v54 = vpop.permute.xlu0 %678  ;;  %v749_v48 = vsel %vm186_vm4, %v743_v41, %v2409_v28  ;;  %v1358_v41 = vld [vmem:[%s2807_s1 + $0x30] ss:$0 sm:$0xff] }
 0x3b3   :  { %v790_v4 = vmul.f32 %v780_v7, %v2863_v63  ;;  %v791_v49 = vmul.f32 %v786_v10, %v2865_v56  ;;  %v763_v21 = vmul.f32 %v749_v48, %v2872_v60  ;;  %v687_v24 = vsel %vm144_vm6, %v2413_v26, %v679_v54  ;;  %v2877_v26 = vld [vmem:[#allocation33_spill] sm:$0xff] }
 0x3b4   :  { %v685_v32 = vsel %vm144_vm6, %v679_v54, %v2439_v43  ;;  %v684_v40 = vsel %vm144_vm6, %v677_v55, %v2877_v26  ;;  %v698_v36 = vmul.f32 %v687_v24, %v2878_v51  ;;  %v2879_v43 = vld [vmem:[#allocation23_spill] sm:$0xff]  ;;  %v645_v54 = vpop.permute.xlu2 %644 }
 0x3b5   :  { %1002 = vmatmul.f32.gmra.mxu2 %v2593_v29  ;;  %1046 = vmatpush.msrb.mxu1 %v790_v4  ;;  %v699_v53 = vmul.f32 %v685_v32, %v2879_v43  ;;  %v654_v15 = vsel %vm123_vm7, %v2864_v59, %v645_v54 }
 0x3b6   :  { %1104 = vmatpush.msrb.mxu0 %v791_v49  ;;  %v662_v60 = vmul.f32 %v654_v15, %v2880_v17 }
 0x3b7   :  { %1047 = vmatpush.msrb.mxu1 %v2867_v11 }
 0x3b8   :  { %1105 = vmatpush.msrb.mxu0 %v2868_v42  ;;  %1317 = vmatmul.msk.f32.gmra.mxu3 %vm912_vm9, %v2555_v3 }
 0x3b9   :  { %950 = vmatmul.f32.gmra.mxu0 %v2646_v27  ;;  %v711_v28 = vpop.permute.xlu1 %710  ;;  %1048 = vmatpush.msrb.mxu1 %v2871_v44 }
 0x3ba   :  { %v719_v13 = vsel %vm165_vm5, %v2400_v37, %v711_v28  ;;  %1106 = vmatpush.msrb.mxu0 %v2873_v14  ;;  %v717_v63 = vsel %vm165_vm5, %v711_v28, %v2874_v38  ;;  %v716_v37 = vsel %vm165_vm5, %v709_v45, %v2343_v58  ;;  %v686_v45 = vsel %vm144_vm6, %v2329_v31, %v677_v55  ;;  %v873_v12 = vpop.permute.xlu0 %872  ;;  %v2881_v28 = vld [vmem:[#allocation25_spill] sm:$0xff] }
 0x3bb   :  { %1049 = vmatpush.msrb.mxu1 %v762_v25  ;;  %v730_v56 = vmul.f32 %v719_v13, %v2875_v16  ;;  %v731_v57 = vmul.f32 %v717_v63, %v2876_v5  ;;  %v727_v58 = vmul.f32 %v716_v37, %v2876_v5  ;;  %v694_v7 = vmul.f32 %v686_v45, %v2878_v51 }
 0x3bc   :  { %1107 = vmatpush.msrb.mxu0 %v763_v21  ;;  %v876_v10 = vsel %vm270_vm0, %v2513_v35, %v873_v12  ;;  %v882_v6 = vsel %vm270_vm0, %v873_v12, %v2394_v62  ;;  %v1174_v62 = vld [vmem:[%s2812_s6 + $0x38] sm:$0xf]  ;;  %v652_v25 = vsel %vm123_vm7, %v645_v54, %v2376_v9  ;;  %v2772_v13 = vpop.permute.xlu2 %899  ;;  %s1529_s6 = smov [#allocation11]  }
 0x3bd   :  { %1005 = vmatmul.f32.gmra.mxu2 %v2625_v61  ;;  %1050 = vmatpush.msrb.mxu1 %v758_v20  ;;  %v886_v35 = vmul.f32 %v1358_v41, %v876_v10  ;;  %s1286_s18 = sshll.u32 %s1529_s6, 4  ;;  %s1287_s18 = int_to_ptr.vmem [resolvable:$true] %s1286_s18 }
 0x3be   :  { %1108 = vmatpush.msrb.mxu0 %v759_v30  ;;  %1177 = vperm.xlu1 %1352, %v1174_v62  }
 0x3bf   :  { %1051 = vmatpush.msrb.mxu1 %v730_v56 }
 0x3c0   :  { %1109 = vmatpush.msrb.mxu0 %v731_v57  ;;  %1318 = vmatmul.msk.f32.gmra.mxu3 %vm912_vm9, %v2604_v22 }
 0x3c1   :  { %v875_v50 = vpop.permute.xlu1 %874  ;;  %1052 = vmatpush.msrb.mxu1 %v726_v23 }
 0x3c2   :  { %v877_v2 = vsel %vm270_vm0, %v2608_v52, %v875_v50  ;;  %v883_v31 = vsel %vm270_vm0, %v875_v50, %v2474_v18  ;;  %1110 = vmatpush.msrb.mxu0 %v727_v58  ;;  %v1359_v52 = vld [vmem:[%s2807_s1 + $0x38] ss:$0 sm:$0xff]  ;;  %v695_v18 = vmul.f32 %v684_v40, %v2879_v43 }
 0x3c3   :  { %v890_v4 = vmul.f32 %v1358_v41, %v877_v2  ;;  %v891_v49 = vmul.f32 %v1359_v52, %v883_v31  ;;  %1053 = vmatpush.msrb.mxu1 %v698_v36  ;;  %v887_v48 = vmul.f32 %v1359_v52, %v882_v6  ;;  %v2779_v58 = vld [vmem:[#allocation10] sm:$0xf] }
 0x3c4   :  { %1111 = vmatpush.msrb.mxu0 %v699_v53 }
 0x3c5   :  { %1008 = vmatmul.f32.gmra.mxu2 %v2646_v27  ;;  %1054 = vmatpush.msrb.mxu1 %v694_v7 }
 0x3c6   :  { %1084 = vmatpush.msrb.mxu3 %v890_v4  ;;  %1112 = vmatpush.msrb.mxu0 %v695_v18 }
 0x3c7   :  { %1142 = vmatpush.msrb.mxu2 %v891_v49 }
 0x3c8   :  { %1085 = vmatpush.msrb.mxu3 %v886_v35 }
 0x3c9   :  { %1143 = vmatpush.msrb.mxu2 %v887_v48  ;;  %1319 = vmatmul.msk.f32.gmra.mxu3 %vm912_vm9, %v2627_v33  ;;  %v647_v11 = vpop.permute.xlu1 %646 }
 0x3ca   :  { %v653_v42 = vsel %vm123_vm7, %v647_v11, %v2511_v1  ;;  %v655_v47 = vsel %vm123_vm7, %v2433_v46, %v647_v11  ;;  %v663_v1 = vmul.f32 %v652_v25, %v2881_v28 }
 0x3cb   :  { %v666_v0 = vmul.f32 %v655_v47, %v2880_v17  ;;  %v667_v44 = vmul.f32 %v653_v42, %v2881_v28 }
 0x3cd   :  { %1324 = vmatmul.msk.f32.vlgmr.msrb.gmra.mxu2 %vm912_vm9, %v2502_v19  ;;  %1055 = vmatpush.msrb.mxu1 %v666_v0 }
 0x3ce   :  { %1113 = vmatpush.msrb.mxu0 %v667_v44 }
 0x3cf   :  { %1056 = vmatpush.msrb.mxu1 %v662_v60 }
 0x3d0   :  { %1114 = vmatpush.msrb.mxu0 %v663_v1  ;;  %1057 = vmatmul.f32.vlgmr.msrb.gmra.mxu1 %v2543_v34 }
 0x3d1   :  { %1320 = vmatmul.msk.f32.vlgmr.msrb.gmra.mxu3 %vm912_vm9, %v2502_v19  ;;  %1115 = vmatmul.f32.vlgmr.msrb.gmra.mxu0 %v2543_v34 }
 0x3d5   :  { %1325 = vmatmul.msk.f32.gmra.mxu2 %vm912_vm9, %v2555_v3 }
 0x3d8   :  { %1060 = vmatmul.f32.gmra.mxu1 %v2593_v29 }
 0x3d9   :  { %1321 = vmatmul.msk.f32.gmra.mxu3 %vm912_vm9, %v2555_v3  ;;  %1118 = vmatmul.f32.gmra.mxu0 %v2593_v29  ;;  %v2767_v29 = vpop.permute.xlu0 %909 }
 0x3dd   :  { %1326 = vmatmul.msk.f32.gmra.mxu2 %vm912_vm9, %v2604_v22 }
 0x3e0   :  { %1063 = vmatmul.f32.gmra.mxu1 %v2625_v61 }
 0x3e1   :  { %1322 = vmatmul.msk.f32.gmra.mxu3 %vm912_vm9, %v2604_v22  ;;  %1121 = vmatmul.f32.gmra.mxu0 %v2625_v61  ;;  %v2776_v63 = vpop.permute.xlu0 %894 }
 0x3e5   :  { %1327 = vmatmul.msk.f32.gmra.mxu2 %vm912_vm9, %v2627_v33 }
 0x3e8   :  { %1066 = vmatmul.f32.gmra.mxu1 %v2646_v27 }
 0x3e9   :  { %1323 = vmatmul.msk.f32.gmra.mxu3 %vm912_vm9, %v2627_v33  ;;  %1124 = vmatmul.f32.gmra.mxu0 %v2646_v27 }
 0x415   :  { %v971_v8 = vpop.f32.mrf.mxu1 }
 0x418   :  { %v2769_v22 = vpop.permute.xlu1 %904 }
 0x41d   :  { %v942_v9 = vpop.f32.mrf.mxu0 }
 0x41e   :  { %v974_v46 = vpop.f32.mrf.mxu1  ;;  %v943_v30 = vadd.f32 %v942_v9, %v2776_v63 }
 0x420   :  { %v972_v5 = vadd.f32 %v971_v8, %v943_v30 }
 0x422   :  { %v1157_v32 = vmax.f32 %v972_v5, 0.0 }
 0x425   :  { %v945_v19 = vpop.f32.mrf.mxu0 }
 0x426   :  { %v977_v34 = vpop.f32.mrf.mxu1  ;;  %v946_v27 = vadd.f32 %v945_v19, %v2772_v13 }
 0x428   :  { %v975_v55 = vadd.f32 %v974_v46, %v946_v27 }
 0x42a   :  { %v1161_v57 = vmax.f32 %v975_v55, 0.0 }
 0x42d   :  { %v948_v3 = vpop.f32.mrf.mxu0 }
 0x42e   :  { %v949_v21 = vadd.f32 %v948_v3, %v2769_v22  ;;  %v980_v33 = vpop.f32.mrf.mxu1 }
 0x430   :  { %v1000_v59 = vpop.f32.mrf.mxu2  ;;  %v978_v38 = vadd.f32 %v977_v34, %v949_v21 }
 0x431   :  { %v1001_v31 = vadd.f32 %v1000_v59, %v2776_v63 }
 0x432   :  { %v1165_v24 = vmax.f32 %v978_v38, 0.0 }
 0x433   :  { %v1029_v61 = vpop.f32.mrf.mxu3 }
 0x434   :  { %v1030_v4 = vadd.f32 %v1029_v61, %v1001_v31 }
 0x436   :  { %v951_v14 = vpop.f32.mrf.mxu0  ;;  %v1158_v6 = vmax.f32 %v1030_v4, 0.0 }
 0x437   :  { %v952_v20 = vadd.f32 %v951_v14, %v2767_v29 }
 0x438   :  { %v1003_v39 = vpop.f32.mrf.mxu2 }
 0x439   :  { %v981_v37 = vadd.f32 %v980_v33, %v952_v20  ;;  %v1004_v36 = vadd.f32 %v1003_v39, %v2772_v13 }
 0x43b   :  { %v1169_v16 = vmax.f32 %v981_v37, 0.0  ;;  %v1032_v56 = vpop.f32.mrf.mxu3 }
 0x43c   :  { %v1033_v7 = vadd.f32 %v1032_v56, %v1004_v36 }
 0x43d   :  { %1196 = vmatpush.msra.mxu1 %v1169_v16  ;;  %v1178_v16 = vpop.permute.xlu1 %1177 }
 0x43e   :  { %v1162_v49 = vmax.f32 %v1033_v7, 0.0 }
 0x43f   :  { %1197 = vmatpush.msra.mxu1 %v1165_v24 }
 0x440   :  { %v1006_v23 = vpop.f32.mrf.mxu2 }
 0x441   :  { %1198 = vmatpush.msra.mxu1 %v1161_v57  ;;  %v1007_v26 = vadd.f32 %v1006_v23, %v2769_v22 }
 0x443   :  { %1199 = vmatpush.msra.mxu1 %v1157_v32  ;;  %v1035_v45 = vpop.f32.mrf.mxu3 }
 0x444   :  { %1328 = vmatmul.msk.f32.vlgmr.msra.gmra.mxu1 %vm1180_vm10, %v2779_v58  ;;  %v1036_v50 = vadd.f32 %v1035_v45, %v1007_v26 }
 0x446   :  { %v1166_v52 = vmax.f32 %v1036_v50, 0.0 }
 0x448   :  { %v1009_v12 = vpop.f32.mrf.mxu2 }
 0x449   :  { %v1010_v40 = vadd.f32 %v1009_v12, %v2767_v29 }
 0x44c   :  { %v1038_v51 = vpop.f32.mrf.mxu3 }
 0x44d   :  { %v1039_v43 = vadd.f32 %v1038_v51, %v1010_v40  ;;  %v1058_v53 = vpop.f32.mrf.mxu1 }
 0x44e   :  { %v1116_v2 = vpop.f32.mrf.mxu0  ;;  %v1059_v20 = vadd.f32 %v1058_v53, %v2776_v63 }
 0x44f   :  { %v1170_v10 = vmax.f32 %v1039_v43, 0.0  ;;  %v1117_v44 = vadd.f32 %v1116_v2, %v2776_v63 }
 0x450   :  { %v1145_v41 = vpop.f32.mrf.mxu2 }
 0x451   :  { %1216 = vmatpush.msra.mxu3 %v1170_v10  ;;  %v1146_v59 = vadd.f32 %v1145_v41, %v1117_v44 }
 0x453   :  { %1217 = vmatpush.msra.mxu3 %v1166_v52  ;;  %v1160_v37 = vmax.f32 %v1146_v59, 0.0 }
 0x454   :  { %v1087_v18 = vpop.f32.mrf.mxu3 }
 0x455   :  { %1218 = vmatpush.msra.mxu3 %v1162_v49  ;;  %v1061_v35 = vpop.f32.mrf.mxu1  ;;  %v1088_v55 = vadd.f32 %v1087_v18, %v1059_v20 }
 0x456   :  { %v1119_v54 = vpop.f32.mrf.mxu0  ;;  %v1062_v21 = vadd.f32 %v1061_v35, %v2772_v13 }
 0x457   :  { %1219 = vmatpush.msra.mxu3 %v1158_v6  ;;  %v1120_v0 = vadd.f32 %v1119_v54, %v2772_v13  ;;  %v1159_v13 = vmax.f32 %v1088_v55, 0.0 }
 0x458   :  { %v1148_v48 = vpop.f32.mrf.mxu2  ;;  %1329 = vmatmul.msk.f32.vlgmr.msra.gmra.mxu3 %vm1180_vm10, %v2779_v58 }
 0x459   :  { %v1149_v46 = vadd.f32 %v1148_v48, %v1120_v0 }
 0x45b   :  { %v1164_v38 = vmax.f32 %v1149_v46, 0.0 }
 0x45c   :  { %v1090_v11 = vpop.f32.mrf.mxu3 }
 0x45d   :  { %v1064_v62 = vpop.f32.mrf.mxu1  ;;  %v1091_v39 = vadd.f32 %v1090_v11, %v1062_v21 }
 0x45e   :  { %v1122_v15 = vpop.f32.mrf.mxu0  ;;  %v1065_v19 = vadd.f32 %v1064_v62, %v2769_v22 }
 0x45f   :  { %v1123_v25 = vadd.f32 %v1122_v15, %v2769_v22 }
 0x460   :  { %v1151_v42 = vpop.f32.mrf.mxu2 }
 0x461   :  { %v1152_v8 = vadd.f32 %v1151_v42, %v1123_v25 }
 0x463   :  { %v1168_v14 = vmax.f32 %v1152_v8, 0.0 }
 0x464   :  { %v1093_v47 = vpop.f32.mrf.mxu3 }
 0x465   :  { %v1067_v60 = vpop.f32.mrf.mxu1  ;;  %v1094_v33 = vadd.f32 %v1093_v47, %v1065_v19 }
 0x466   :  { %v1125_v17 = vpop.f32.mrf.mxu0  ;;  %v1068_v34 = vadd.f32 %v1067_v60, %v2767_v29 }
 0x467   :  { %v1126_v28 = vadd.f32 %v1125_v17, %v2767_v29  ;;  %v1167_v22 = vmax.f32 %v1094_v33, 0.0  ;;  %v1163_v29 = vmax.f32 %v1091_v39, 0.0 }
 0x468   :  { %v1154_v1 = vpop.f32.mrf.mxu2 }
 0x469   :  { %v1155_v9 = vadd.f32 %v1154_v1, %v1126_v28 }
 0x46b   :  { %v1172_v3 = vmax.f32 %v1155_v9, 0.0 }
 0x46c   :  { %v1096_v61 = vpop.f32.mrf.mxu3 }
 0x46d   :  { %v1097_v27 = vadd.f32 %v1096_v61, %v1068_v34  ;;  %1256 = vmatpush.msrb.mxu3 %v1172_v3 }
 0x46f   :  { %v1171_v30 = vmax.f32 %v1097_v27, 0.0  ;;  %1257 = vmatpush.msrb.mxu3 %v1168_v14 }
 0x471   :  { %1236 = vmatpush.msrb.mxu1 %v1171_v30  ;;  %1258 = vmatpush.msrb.mxu3 %v1164_v38 }
 0x473   :  { %1237 = vmatpush.msrb.mxu1 %v1167_v22  ;;  %1259 = vmatpush.msrb.mxu3 %v1160_v37 }
 0x474   :  { %1331 = vmatmul.msk.f32.vlgmr.msrb.gmra.mxu3 %vm1180_vm10, %v2779_v58 }
 0x475   :  { %1238 = vmatpush.msrb.mxu1 %v1163_v29 }
 0x477   :  { %1239 = vmatpush.msrb.mxu1 %v1159_v13 }
 0x478   :  { %1330 = vmatmul.msk.f32.vlgmr.msrb.gmra.mxu1 %vm1180_vm10, %v2779_v58 }
 0x4c1   :  { %v1201_v63 = vpop.f32.mrf.mxu1 }
 0x4c2   :  { %v1202_v24 = vadd.f32 %v1201_v63, %v1178_v16 }
 0x4c4   :  { %v1264_v23 = vmax.f32 %v1202_v24, 0.0 }
 0x4db   :  { %v1221_v56 = vpop.f32.mrf.mxu3 }
 0x4dc   :  { %v1222_v5 = vadd.f32 %v1221_v56, %v1178_v16 }
 0x4de   :  { %v1265_v57 = vmax.f32 %v1222_v5, 0.0 }
 0x4e0   :  { %v1272_v32 = vrot.slane %v1265_v57, 4 }
 0x4e2   :  { %v1275_v45 = vsel %vm1274_vm11, %v1264_v23, %v1272_v32 }
 0x4e3   :  { %1279 = vst [vmem:[#allocation11] sm:$0xff] %v1275_v45 }
 0x4f5   :  { %v1241_v12 = vpop.f32.mrf.mxu1 }
 0x4f6   :  { %v1242_v40 = vadd.f32 %v1241_v12, %v1178_v16 }
 0x4f7   :  { %v1261_v26 = vpop.f32.mrf.mxu3 }
 0x4f8   :  { %v1262_v51 = vadd.f32 %v1261_v26, %v1178_v16  ;;  %v1266_v58 = vmax.f32 %v1242_v40, 0.0 }
 0x4fa   :  { %v1267_v36 = vmax.f32 %v1262_v51, 0.0 }
 0x4fc   :  { %v1273_v50 = vrot.slane %v1267_v36, 4 }
 0x4fe   :  { %v1276_v43 = vsel %vm1274_vm11, %v1266_v58, %v1273_v50 }
 0x4ff   :  { %1280 = vst [vmem:[#allocation11 + $0x8] sm:$0xff] %v1276_v43 }
 0x500   :  { %1291 = dma.vmem_to_hbm [thread:$0]  %s1287_s18, 256, %s1289_s20, [#allocation4]  }
 0x501   :  { %1510 = dma.done.wait [#allocation4], 256  }
 0x502   :  { %1511 = vsyncadd [#allocation4], 4294967040 }
 0x503   :  { %1296 = vsyncpa [#allocation3], 1 }
 0x504   :  { %1297 = vsyncpa [#allocation6], 1 }
 0x505   :  { %1298 = vsyncpa [#allocation9], 1 }
 0x506   :  { %1299 = vsyncpa [#allocation4], 1 }

</bundles_post_ra>
